<compile_context>
chip_gen: v7x
topology: tpu7x:2x2x1
jax: 0.10.0
libtpu: 0.0.40
codegen_flags: <defaults>
</compile_context>

<pallas_src>
import jax
import jax.numpy as jnp
from jax.experimental import pallas as pl
from jax.experimental.pallas import tpu as pltpu

LEAKY_SLOPE = 0.01   # nn.LeakyReLU default
IN_EPS = 1e-5        # nn.InstanceNorm2d default (affine=False)


# ---------------------------------------------------------------------------
# helpers
# ---------------------------------------------------------------------------
def _round_up(x, m):
    return (x + m - 1) // m * m


def _pick_tile_h(h, w, max_lanes=4096):
    """Largest row tile TH dividing H whose flattened tile TH*W is lane aligned
    (multiple of 128) and not oversized; falls back to TH = H (single tile,
    block == full array dims is always a legal BlockSpec)."""
    for th in range(h, 0, -1):
        if h % th == 0 and (th * w) % 128 == 0 and th * w <= max_lanes:
            return th
    return h


def _vmem_limit(per_step_bytes):
    """Per-generation VMEM budget: the real per-step need, never below the
    32 MiB default, capped at ~85% of physical VMEM (128 MiB v5e/v6e, 64 v7x)."""
    try:
        cap = pltpu.get_tpu_info().vmem_capacity_bytes
    except Exception:
        cap = 128 << 20
    return int(min(max(per_step_bytes, 32 << 20), int(cap * 0.85)))


# ---------------------------------------------------------------------------
# kernel 1: Conv2d(3x3, pad=1) on one halo'd row tile + InstanceNorm partials
# ---------------------------------------------------------------------------
def _conv3x3_stats_kernel(x_ref, w_ref, y_ref, st_ref, col_ref):
    # x_ref  : (1, Cin_p, TH+2, W+2) bf16  zero-padded channels-first halo tile
    # w_ref  : (Cout, 9*Cin_p)       bf16  taps, column = (dy*3 + dx)*Cin_p + c
    # y_ref  : (1, Cout, TH*W)       f32   conv output tile (spatial on lanes)
    # st_ref : (1, 2, Cout)          f32   per-tile [sum, sum of squares]
    # col_ref: (9*Cin_p, TH*W)       bf16  VMEM scratch: im2col for ONE matmul
    cin = x_ref.shape[1]
    th, wp = x_ref.shape[2] - 2, x_ref.shape[3] - 2
    m = th * wp

    x = x_ref[0]                                    # (Cin_p, TH+2, W+2)
    # im2col fill: the dy (sublane) shift is shared across the three dx taps,
    # only the cheap lane shift is redone per tap.
    for dy in range(3):
        rows = x[:, dy:dy + th, :]                  # (Cin_p, TH, W+2)
        for dx in range(3):
            tap = dy * 3 + dx
            col_ref[pl.ds(tap * cin, cin), :] = (
                rows[:, :, dx:dx + wp].reshape(cin, m))

    # Single MXU matmul, K = 9*Cin_p; bf16 operands, f32 accumulation.
    # Weights on the LHS -> result is already (Cout, M_tile): channels on
    # sublanes, spatial on lanes -> lane-dense store, no XLU transpose.
    acc = jnp.dot(w_ref[...], col_ref[...], preferred_element_type=jnp.float32)
    y_ref[0] = acc

    # Per-tile InstanceNorm partial stats (reduced across tiles in the glue).
    st_ref[0, 0, :] = jnp.sum(acc, axis=1)
    st_ref[0, 1, :] = jnp.sum(acc * acc, axis=1)


# ---------------------------------------------------------------------------
# kernel 2: per-(sample, channel) normalize + LeakyReLU
# ---------------------------------------------------------------------------
def _instnorm_lrelu_kernel(y_ref, sc_ref, sh_ref, o_ref):
    # y_ref: (1, Cout, M_t) f32; sc/sh: (1, Cout, 1) f32; o_ref: (1, Cout, M_t)
    z = y_ref[0] * sc_ref[0] + sh_ref[0]
    o_ref[0] = jnp.maximum(z, LEAKY_SLOPE * z).astype(o_ref.dtype)


# ---------------------------------------------------------------------------
# fused Conv3x3 -> InstanceNorm -> LeakyReLU
# ---------------------------------------------------------------------------
def conv3x3_instnorm_lrelu(x, w, b=None, *, tile_h=None):
    """Conv2d(3x3, pad=1, bias) -> InstanceNorm2d(affine=False) -> LeakyReLU(0.01).

    x: (N, Cin, H, W), w: (Cout, Cin, 3, 3), b: (Cout,) or None.
    The conv bias is cancelled exactly by the per-(n, c) mean subtraction of
    InstanceNorm2d(affine=False) that immediately follows, so it is not used.
    """
    del b  # cancelled by InstanceNorm2d(affine=False); see note above.
    n, cin, h, wd = x.shape
    cout = w.shape[0]
    out_dtype = x.dtype

    th = tile_h if tile_h is not None else _pick_tile_h(h, wd)
    assert h % th == 0, (h, th)
    t = h // th
    m_t = th * wd
    m = h * wd
    cin_p = _round_up(cin, 8)        # sublane-aligned K blocks; zeros are free
    k = 9 * cin_p

    # ---- glue: pure data movement ------------------------------------------
    xp = jnp.pad(x, ((0, 0), (0, cin_p - cin), (1, 1), (1, 1)))
    xp = xp.astype(jnp.bfloat16)                       # (N, Cin_p, H+2, W+2)
    rows = jnp.arange(t)[:, None] * th + jnp.arange(th + 2)[None, :]
    slab = xp[:, :, rows, :]                           # (N, Cin_p, T, TH+2, W+2)
    slab = slab.transpose(0, 2, 1, 3, 4).reshape(n * t, cin_p, th + 2, wd + 2)

    w_p = jnp.pad(w, ((0, 0), (0, cin_p - cin), (0, 0), (0, 0)))
    w2 = jnp.transpose(w_p, (0, 2, 3, 1)).reshape(cout, k).astype(jnp.bfloat16)

    # ---- pass 1: conv + per-tile InstanceNorm partials ----------------------
    conv_need = (2 * (cin_p * (th + 2) * (wd + 2) * 2 + cout * m_t * 4
                      + 2 * cout * 4)
                 + cout * k * 2 + k * m_t * 2 + 2 * cout * m_t * 4 + (4 << 20))
    y32, stats = pl.pallas_call(
        _conv3x3_stats_kernel,
        out_shape=(jax.ShapeDtypeStruct((n, cout, m), jnp.float32),
                   jax.ShapeDtypeStruct((n * t, 2, cout), jnp.float32)),
        grid_spec=pltpu.PrefetchScalarGridSpec(
            num_scalar_prefetch=0,
            grid=(n, t),
            in_specs=[
                pl.BlockSpec((1, cin_p, th + 2, wd + 2),
                             lambda bb, ii: (bb * t + ii, 0, 0, 0)),
                pl.BlockSpec((cout, k), lambda bb, ii: (0, 0)),
            ],
            out_specs=(
                pl.BlockSpec((1, cout, m_t), lambda bb, ii: (bb, 0, ii)),
                pl.BlockSpec((1, 2, cout), lambda bb, ii: (bb * t + ii, 0, 0)),
            ),
            scratch_shapes=[pltpu.VMEM((k, m_t), jnp.bfloat16)],
        ),
        compiler_params=pltpu.CompilerParams(
            dimension_semantics=("parallel", "parallel"),
            vmem_limit_bytes=_vmem_limit(conv_need)),
    )(slab, w2)

    # ---- glue: finalize InstanceNorm statistics (tiny) ----------------------
    stats = stats.reshape(n, t, 2, cout)
    mean = jnp.sum(stats[:, :, 0, :], axis=1) / m                  # (N, Cout)
    ex2 = jnp.sum(stats[:, :, 1, :], axis=1) / m
    var = jnp.maximum(ex2 - mean * mean, 0.0)    # single-pass cancellation guard
    scale = jax.lax.rsqrt(var + IN_EPS)
    shift = -mean * scale

    # ---- pass 2: normalize + LeakyReLU --------------------------------------
    norm_need = (2 * (cout * m_t * 4
                      + cout * m_t * jnp.dtype(out_dtype).itemsize
                      + 2 * cout * 4)
                 + cout * m_t * 4 + (2 << 20))
    out = pl.pallas_call(
        _instnorm_lrelu_kernel,
        out_shape=jax.ShapeDtypeStruct((n, cout, m), out_dtype),
        grid_spec=pltpu.PrefetchScalarGridSpec(
            num_scalar_prefetch=0,
            grid=(n, t),
            in_specs=[
                pl.BlockSpec((1, cout, m_t), lambda bb, ii: (bb, 0, ii)),
                pl.BlockSpec((1, cout, 1), lambda bb, ii: (bb, 0, 0)),
                pl.BlockSpec((1, cout, 1), lambda bb, ii: (bb, 0, 0)),
            ],
            out_specs=pl.BlockSpec((1, cout, m_t), lambda bb, ii: (bb, 0, ii)),
        ),
        compiler_params=pltpu.CompilerParams(
            dimension_semantics=("parallel", "parallel"),
            vmem_limit_bytes=_vmem_limit(norm_need)),
    )(y32, scale[:, :, None], shift[:, :, None])

    return out.reshape(n, cout, h, wd)


# ---------------------------------------------------------------------------
# module-level pieces (data-movement glue + the fused Pallas conv block)
# ---------------------------------------------------------------------------
def double_conv_block(x, p):
    """DoubleConvBlock: (Conv3x3 => InstanceNorm => LeakyReLU) * 2."""
    x = conv3x3_instnorm_lrelu(x, p["w1"], p["b1"])
    return conv3x3_instnorm_lrelu(x, p["w2"], p["b2"])


def conv_transpose_2x2(x, w, b):
    """nn.ConvTranspose2d(Cin, Cout, kernel_size=2, stride=2); w: (Cin, Cout, 2, 2)."""
    n, _, h, wd = x.shape
    y = jnp.einsum("nchw,codk->nohdwk", x, w).reshape(n, w.shape[1], 2 * h, 2 * wd)
    return y + b[None, :, None, None]


def cross_modality_fusion(prev, c0_skip, t2_skip, de_skip, p):
    """CrossModality3MFusion.forward (skips arrive already warped / identity)."""
    prev = conv_transpose_2x2(prev, p["up_w"], p["up_b"])
    att_c0 = jax.nn.sigmoid(c0_skip)
    att_t2 = jax.nn.sigmoid(t2_skip)
    att = 0.5 * (att_c0 + att_t2)
    main = jnp.concatenate([prev, de_skip * att, att_c0, att_t2], axis=1)
    return double_conv_block(main, p["conv"])


def out_head(x, p):
    """outc: DoubleConvBlock(C, C//2) -> Conv2d(C//2, out_c, kernel_size=1)."""
    x = double_conv_block(x, p["conv"])
    return (jnp.einsum("nchw,oc->nohw", x, p["w1x1"][:, :, 0, 0])
            + p["b1x1"][None, :, None, None])


def decoder_forward(previous, skips_c0, skips_t2, skips_de, fusion_params,
                    out_params, theta_c0=None, theta_t2=None):
    """MultiModality3MTpsDecoder.forward.

    # TODO(synk): TPSGridGen + my_grid_sample (theta-driven warp of the c0/t2
    # skips) are not in the provided spec; thetas are ignored (identity warp).
    """
    del theta_c0, theta_t2
    for i, p in enumerate(fusion_params):
        previous = cross_modality_fusion(
            previous, skips_c0[-i - 1], skips_t2[-i - 1], skips_de[-i - 1], p)
    return out_head(previous, out_params)


# ---------------------------------------------------------------------------
# pure-JAX f32 references (PyTorch semantics)
# ---------------------------------------------------------------------------
def _ref_conv_block(x, w, b):
    y = jax.lax.conv_general_dilated(
        x, w, (1, 1), ((1, 1), (1, 1)),
        dimension_numbers=("NCHW", "OIHW", "NCHW"))
    y = y + b[None, :, None, None]
    mean = y.mean(axis=(2, 3), keepdims=True)
    var = ((y - mean) ** 2).mean(axis=(2, 3), keepdims=True)
    yn = (y - mean) * jax.lax.rsqrt(var + IN_EPS)
    return jnp.where(yn >= 0, yn, LEAKY_SLOPE * yn)


def _ref_double_conv(x, p):
    return _ref_conv_block(_ref_conv_block(x, p["w1"], p["b1"]), p["w2"], p["b2"])


def _ref_fusion(prev, c0, t2, de, p):
    prev = conv_transpose_2x2(prev, p["up_w"], p["up_b"])
    a0, a2 = jax.nn.sigmoid(c0), jax.nn.sigmoid(t2)
    main = jnp.concatenate([prev, de * 0.5 * (a0 + a2), a0, a2], axis=1)
    return _ref_double_conv(main, p["conv"])


def _ref_out_head(x, p):
    x = _ref_double_conv(x, p["conv"])
    return (jnp.einsum("nchw,oc->nohw", x, p["w1x1"][:, :, 0, 0])
            + p["b1x1"][None, :, None, None])


# ---------------------------------------------------------------------------
# deterministic parameter construction
# ---------------------------------------------------------------------------
def _conv_params(key, cin, cout):
    k1, k2, k3, k4 = jax.random.split(key, 4)
    return {"w1": 0.1 * jax.random.normal(k1, (cout, cin, 3, 3), jnp.float32),
            "b1": 0.1 * jax.random.normal(k2, (cout,), jnp.float32),
            "w2": 0.1 * jax.random.normal(k3, (cout, cout, 3, 3), jnp.float32),
            "b2": 0.1 * jax.random.normal(k4, (cout,), jnp.float32)}


def _fusion_params(key, nf):
    k1, k2, k3 = jax.random.split(key, 3)
    return {"up_w": 0.1 * jax.random.normal(k1, (nf, nf // 2, 2, 2), jnp.float32),
            "up_b": 0.1 * jax.random.normal(k2, (nf // 2,), jnp.float32),
            "conv": _conv_params(k3, nf, nf // 2)}


def _max_err(a, b):
    return float(jnp.max(jnp.abs(a - b)))


if __name__ == "__main__":
    key = jax.random.PRNGKey(0)
    ks = jax.random.split(key, 10)

    # ---- 1. primary check: one fused conv+IN+LeakyReLU block, tiled (T=2) ----
    # Tolerances account for bf16 matmul operands (f32 accumulation) on
    # normalized O(1) outputs; real bugs would show O(1) errors.
    x = jax.random.normal(ks[0], (2, 4, 16, 16), jnp.float32)
    w = 0.1 * jax.random.normal(ks[1], (8, 4, 3, 3), jnp.float32)
    b = 0.1 * jax.random.normal(ks[2], (8,), jnp.float32)
    out = jax.block_until_ready(conv3x3_instnorm_lrelu(x, w, b, tile_h=8))
    assert out.shape == (2, 8, 16, 16), out.shape
    err = _max_err(out, _ref_conv_block(x, w, b))
    assert err < 5e-2, f"conv+IN+LeakyReLU mismatch: max|err|={err}"

    # ---- 2. DoubleConvBlock ----
    pdc = _conv_params(ks[3], 4, 8)
    out = jax.block_until_ready(double_conv_block(x, pdc))
    err = _max_err(out, _ref_double_conv(x, pdc))
    assert err < 1e-1, f"DoubleConvBlock mismatch: max|err|={err}"

    # ---- 3. one decoder step: CrossModality3MFusion (nf=24) + outc head -----
    # (mini decoder with filter=[24, 12], out_c=3; identity TPS warp)
    prev = jax.random.normal(ks[4], (2, 24, 8, 8), jnp.float32)
    c0 = jax.random.normal(ks[5], (2, 4, 16, 16), jnp.float32)
    t2 = jax.random.normal(ks[6], (2, 4, 16, 16), jnp.float32)
    de = jax.random.normal(ks[7], (2, 4, 16, 16), jnp.float32)
    pf = _fusion_params(ks[8], 24)
    ko1, ko2, ko3 = jax.random.split(ks[9], 3)
    po = {"conv": _conv_params(ko1, 12, 6),
          "w1x1": 0.1 * jax.random.normal(ko2, (3, 6, 1, 1), jnp.float32),
          "b1x1": 0.1 * jax.random.normal(ko3, (3,), jnp.float32)}
    out = jax.block_until_ready(
        decoder_forward(prev, [c0], [t2], [de], [pf], po))
    assert out.shape == (2, 3, 16, 16), out.shape
    ref = _ref_out_head(_ref_fusion(prev, c0, t2, de, pf), po)
    err = _max_err(out, ref)
    assert err < 2e-1, f"decoder step mismatch: max|err|={err}"

    print("KERNEL_OK")
</pallas_src>

<mosaic_0001>
module attributes {stable_mosaic.version = 11 : i64} {
  func.func @_conv3x3_stats_kernel(%arg0: i32, %arg1: i32, %arg2: memref<1x8x10x18xbf16, #tpu.memory_space<vmem>>, %arg3: memref<8x72xbf16, #tpu.memory_space<vmem>>, %arg4: memref<1x8x128xf32, #tpu.memory_space<vmem>>, %arg5: memref<1x2x8xf32, #tpu.memory_space<vmem>>, %arg6: memref<72x128xbf16, #tpu.memory_space<vmem>>) attributes {dimension_semantics = [#tpu.dimension_semantics<parallel>, #tpu.dimension_semantics<parallel>], iteration_bounds = array<i64: 2, 2>, scalar_prefetch = 0 : i64, scratch_operands = 1 : i64, tpu.core_type = #tpu.core_type<tc>, window_params = [{transform_indices = @transform_0, window_bounds = array<i64: 1, 8, 10, 18>}, {pipeline_mode = #tpu.pipeline_mode<synchronous>, transform_indices = @transform_1, window_bounds = array<i64: 8, 72>}, {transform_indices = @transform_2, window_bounds = array<i64: 1, 8, 128>}, {transform_indices = @transform_3, window_bounds = array<i64: 1, 2, 8>}]} {
    %c0 = arith.constant 0 : index
    %c0_0 = arith.constant 0 : index
    %c0_1 = arith.constant 0 : index
    %c0_2 = arith.constant 0 : index
    %0 = vector.load %arg2[%c0, %c0_0, %c0_1, %c0_2] : memref<1x8x10x18xbf16, #tpu.memory_space<vmem>>, vector<1x8x10x18xbf16>
    %1 = vector.shape_cast %0 : vector<1x8x10x18xbf16> to vector<8x10x18xbf16>
    %2 = vector.extract_strided_slice %1 {offsets = [0, 0, 0], sizes = [8, 8, 18], strides = [1, 1, 1]} : vector<8x10x18xbf16> to vector<8x8x18xbf16>
    %3 = vector.extract_strided_slice %2 {offsets = [0, 0, 0], sizes = [8, 8, 16], strides = [1, 1, 1]} : vector<8x8x18xbf16> to vector<8x8x16xbf16>
    %4 = vector.shape_cast %3 : vector<8x8x16xbf16> to vector<8x128xbf16>
    %c0_3 = arith.constant 0 : index
    %c0_4 = arith.constant 0 : index
    %5 = vector.load %arg6[%c0_3, %c0_4] : memref<72x128xbf16, #tpu.memory_space<vmem>>, vector<8x128xbf16>
    tpu.vector_store %arg6[%c0_3, %c0_4], %4 {strides = array<i32>} : memref<72x128xbf16, #tpu.memory_space<vmem>>, vector<8x128xbf16>,
    %6 = vector.extract_strided_slice %2 {offsets = [0, 0, 1], sizes = [8, 8, 16], strides = [1, 1, 1]} : vector<8x8x18xbf16> to vector<8x8x16xbf16>
    %7 = vector.shape_cast %6 : vector<8x8x16xbf16> to vector<8x128xbf16>
    %c8 = arith.constant 8 : index
    %c0_5 = arith.constant 0 : index
    %8 = vector.load %arg6[%c8, %c0_5] : memref<72x128xbf16, #tpu.memory_space<vmem>>, vector<8x128xbf16>
    tpu.vector_store %arg6[%c8, %c0_5], %7 {strides = array<i32>} : memref<72x128xbf16, #tpu.memory_space<vmem>>, vector<8x128xbf16>,
    %9 = vector.extract_strided_slice %2 {offsets = [0, 0, 2], sizes = [8, 8, 16], strides = [1, 1, 1]} : vector<8x8x18xbf16> to vector<8x8x16xbf16>
    %10 = vector.shape_cast %9 : vector<8x8x16xbf16> to vector<8x128xbf16>
    %c16 = arith.constant 16 : index
    %c0_6 = arith.constant 0 : index
    %11 = vector.load %arg6[%c16, %c0_6] : memref<72x128xbf16, #tpu.memory_space<vmem>>, vector<8x128xbf16>
    tpu.vector_store %arg6[%c16, %c0_6], %10 {strides = array<i32>} : memref<72x128xbf16, #tpu.memory_space<vmem>>, vector<8x128xbf16>,
    %12 = vector.extract_strided_slice %1 {offsets = [0, 1, 0], sizes = [8, 8, 18], strides = [1, 1, 1]} : vector<8x10x18xbf16> to vector<8x8x18xbf16>
    %13 = vector.extract_strided_slice %12 {offsets = [0, 0, 0], sizes = [8, 8, 16], strides = [1, 1, 1]} : vector<8x8x18xbf16> to vector<8x8x16xbf16>
    %14 = vector.shape_cast %13 : vector<8x8x16xbf16> to vector<8x128xbf16>
    %c24 = arith.constant 24 : index
    %c0_7 = arith.constant 0 : index
    %15 = vector.load %arg6[%c24, %c0_7] : memref<72x128xbf16, #tpu.memory_space<vmem>>, vector<8x128xbf16>
    tpu.vector_store %arg6[%c24, %c0_7], %14 {strides = array<i32>} : memref<72x128xbf16, #tpu.memory_space<vmem>>, vector<8x128xbf16>,
    %16 = vector.extract_strided_slice %12 {offsets = [0, 0, 1], sizes = [8, 8, 16], strides = [1, 1, 1]} : vector<8x8x18xbf16> to vector<8x8x16xbf16>
    %17 = vector.shape_cast %16 : vector<8x8x16xbf16> to vector<8x128xbf16>
    %c32 = arith.constant 32 : index
    %c0_8 = arith.constant 0 : index
    %18 = vector.load %arg6[%c32, %c0_8] : memref<72x128xbf16, #tpu.memory_space<vmem>>, vector<8x128xbf16>
    tpu.vector_store %arg6[%c32, %c0_8], %17 {strides = array<i32>} : memref<72x128xbf16, #tpu.memory_space<vmem>>, vector<8x128xbf16>,
    %19 = vector.extract_strided_slice %12 {offsets = [0, 0, 2], sizes = [8, 8, 16], strides = [1, 1, 1]} : vector<8x8x18xbf16> to vector<8x8x16xbf16>
    %20 = vector.shape_cast %19 : vector<8x8x16xbf16> to vector<8x128xbf16>
    %c40 = arith.constant 40 : index
    %c0_9 = arith.constant 0 : index
    %21 = vector.load %arg6[%c40, %c0_9] : memref<72x128xbf16, #tpu.memory_space<vmem>>, vector<8x128xbf16>
    tpu.vector_store %arg6[%c40, %c0_9], %20 {strides = array<i32>} : memref<72x128xbf16, #tpu.memory_space<vmem>>, vector<8x128xbf16>,
    %22 = vector.extract_strided_slice %1 {offsets = [0, 2, 0], sizes = [8, 8, 18], strides = [1, 1, 1]} : vector<8x10x18xbf16> to vector<8x8x18xbf16>
    %23 = vector.extract_strided_slice %22 {offsets = [0, 0, 0], sizes = [8, 8, 16], strides = [1, 1, 1]} : vector<8x8x18xbf16> to vector<8x8x16xbf16>
    %24 = vector.shape_cast %23 : vector<8x8x16xbf16> to vector<8x128xbf16>
    %c48 = arith.constant 48 : index
    %c0_10 = arith.constant 0 : index
    %25 = vector.load %arg6[%c48, %c0_10] : memref<72x128xbf16, #tpu.memory_space<vmem>>, vector<8x128xbf16>
    tpu.vector_store %arg6[%c48, %c0_10], %24 {strides = array<i32>} : memref<72x128xbf16, #tpu.memory_space<vmem>>, vector<8x128xbf16>,
    %26 = vector.extract_strided_slice %22 {offsets = [0, 0, 1], sizes = [8, 8, 16], strides = [1, 1, 1]} : vector<8x8x18xbf16> to vector<8x8x16xbf16>
    %27 = vector.shape_cast %26 : vector<8x8x16xbf16> to vector<8x128xbf16>
    %c56 = arith.constant 56 : index
    %c0_11 = arith.constant 0 : index
    %28 = vector.load %arg6[%c56, %c0_11] : memref<72x128xbf16, #tpu.memory_space<vmem>>, vector<8x128xbf16>
    tpu.vector_store %arg6[%c56, %c0_11], %27 {strides = array<i32>} : memref<72x128xbf16, #tpu.memory_space<vmem>>, vector<8x128xbf16>,
    %29 = vector.extract_strided_slice %22 {offsets = [0, 0, 2], sizes = [8, 8, 16], strides = [1, 1, 1]} : vector<8x8x18xbf16> to vector<8x8x16xbf16>
    %30 = vector.shape_cast %29 : vector<8x8x16xbf16> to vector<8x128xbf16>
    %c64 = arith.constant 64 : index
    %c0_12 = arith.constant 0 : index
    %31 = vector.load %arg6[%c64, %c0_12] : memref<72x128xbf16, #tpu.memory_space<vmem>>, vector<8x128xbf16>
    tpu.vector_store %arg6[%c64, %c0_12], %30 {strides = array<i32>} : memref<72x128xbf16, #tpu.memory_space<vmem>>, vector<8x128xbf16>,
    %c0_13 = arith.constant 0 : index
    %c0_14 = arith.constant 0 : index
    %32 = vector.load %arg3[%c0_13, %c0_14] : memref<8x72xbf16, #tpu.memory_space<vmem>>, vector<8x72xbf16>
    %c0_15 = arith.constant 0 : index
    %c0_16 = arith.constant 0 : index
    %33 = vector.load %arg6[%c0_15, %c0_16] : memref<72x128xbf16, #tpu.memory_space<vmem>>, vector<72x128xbf16>
    %cst = arith.constant dense<0.000000e+00> : vector<8x128xf32>
    %34 = tpu.matmul %32, %33, %cst {dimension_numbers = #tpu.dot_dimension_numbers<[1], [0], [0], [1], [0, 0, 1, 1], [], []>} : vector<8x72xbf16>, vector<72x128xbf16>, vector<8x128xf32> -> vector<8x128xf32>
    %c0_17 = arith.constant 0 : index
    %c0_18 = arith.constant 0 : index
    %c0_19 = arith.constant 0 : index
    %35 = vector.load %arg4[%c0_17, %c0_18, %c0_19] : memref<1x8x128xf32, #tpu.memory_space<vmem>>, vector<1x8x128xf32>
    %36 = vector.shape_cast %35 : vector<1x8x128xf32> to vector<8x128xf32>
    %37 = vector.shape_cast %34 : vector<8x128xf32> to vector<1x8x128xf32>
    tpu.vector_store %arg4[%c0_17, %c0_18, %c0_19], %37 {strides = array<i32>} : memref<1x8x128xf32, #tpu.memory_space<vmem>>, vector<1x8x128xf32>,
    %cst_20 = arith.constant dense<0.000000e+00> : vector<8xf32>
    %38 = vector.multi_reduction <add>, %34, %cst_20 [1] : vector<8x128xf32> to vector<8xf32>
    %c0_21 = arith.constant 0 : index
    %c0_22 = arith.constant 0 : index
    %c0_23 = arith.constant 0 : index
    %39 = vector.load %arg5[%c0_21, %c0_22, %c0_23] : memref<1x2x8xf32, #tpu.memory_space<vmem>>, vector<1x1x8xf32>
    %40 = vector.shape_cast %39 : vector<1x1x8xf32> to vector<8xf32>
    %41 = vector.shape_cast %38 : vector<8xf32> to vector<1x1x8xf32>
    tpu.vector_store %arg5[%c0_21, %c0_22, %c0_23], %41 {strides = array<i32>} : memref<1x2x8xf32, #tpu.memory_space<vmem>>, vector<1x1x8xf32>,
    %42 = arith.mulf %34, %34 : vector<8x128xf32>
    %cst_24 = arith.constant dense<0.000000e+00> : vector<8xf32>
    %43 = vector.multi_reduction <add>, %42, %cst_24 [1] : vector<8x128xf32> to vector<8xf32>
    %c0_25 = arith.constant 0 : index
    %c1 = arith.constant 1 : index
    %c0_26 = arith.constant 0 : index
    %44 = vector.load %arg5[%c0_25, %c1, %c0_26] : memref<1x2x8xf32, #tpu.memory_space<vmem>>, vector<1x1x8xf32>
    %45 = vector.shape_cast %44 : vector<1x1x8xf32> to vector<8xf32>
    %46 = vector.shape_cast %43 : vector<8xf32> to vector<1x1x8xf32>
    tpu.vector_store %arg5[%c0_25, %c1, %c0_26], %46 {strides = array<i32>} : memref<1x2x8xf32, #tpu.memory_space<vmem>>, vector<1x1x8xf32>,
    return
  }
  func.func @transform_0(%arg0: i32, %arg1: i32) -> (i32, i32, i32, i32) {
    %c2_i32 = arith.constant 2 : i32
    %0 = arith.muli %arg0, %c2_i32 : i32
    %1 = arith.addi %0, %arg1 : i32
    %c0_i32 = arith.constant 0 : i32
    %c0_i32_0 = arith.constant 0 : i32
    %c0_i32_1 = arith.constant 0 : i32
    %c0_i32_2 = arith.constant 0 : i32
    return %1, %c0_i32, %c0_i32_0, %c0_i32_1 : i32, i32, i32, i32
  }
  func.func @transform_1(%arg0: i32, %arg1: i32) -> (i32, i32) {
    %c0_i32 = arith.constant 0 : i32
    %c0_i32_0 = arith.constant 0 : i32
    %c0_i32_1 = arith.constant 0 : i32
    return %c0_i32, %c0_i32_0 : i32, i32
  }
  func.func @transform_2(%arg0: i32, %arg1: i32) -> (i32, i32, i32) {
    %c0_i32 = arith.constant 0 : i32
    %c0_i32_0 = arith.constant 0 : i32
    return %arg0, %c0_i32, %arg1 : i32, i32, i32
  }
  func.func @transform_3(%arg0: i32, %arg1: i32) -> (i32, i32, i32) {
    %c2_i32 = arith.constant 2 : i32
    %0 = arith.muli %arg0, %c2_i32 : i32
    %1 = arith.addi %0, %arg1 : i32
    %c0_i32 = arith.constant 0 : i32
    %c0_i32_0 = arith.constant 0 : i32
    %c0_i32_1 = arith.constant 0 : i32
    return %1, %c0_i32, %c0_i32_0 : i32, i32, i32
  }
}

</mosaic_0001>

<bundles_post_ra>
// kernel: tpu_custom_call.1
= control target key start
LH: loop header
LB: loop body
LE: loop exit
PB: predicated region body
PF: predicated region fallthrough
CT: control target
= control target key end

     0   :  { %s3535_s0 = inlined_call_operand.vmem [shape: bf16[4,8,10,18], index: 0, kind: input, shape index: {}]   ;;  %s3536_s1 = inlined_call_operand.vmem [shape: bf16[8,72], index: 1, kind: input, shape index: {}]   ;;  %s3537_s2 = inlined_call_operand.hbm [shape: f32[2,8,256], index: 2, kind: output, shape index: {0}]   ;;  %s3538_s3 = inlined_call_operand.hbm [shape: f32[4,2,8], index: 3, kind: output, shape index: {1}]  }
   0x1   :  { %3542 = sst [smem:[#allocation10_spill]] %s3535_s0 }
   0x2   :  { %3543 = sst [smem:[#allocation11_spill]] %s3538_s3 }
   0x3   :  { %9 = vsyncpa [#allocation4], 0 }
   0x4   :  { %11 = vsyncpa [#allocation4 + $0x1], 0 }
   0x5   :  { %12 = vsyncpa [#allocation6], 0 }
   0x6   :  { %14 = vsyncpa [#allocation6 + $0x1], 0  ;;  %s2474_s12 = smov 0   ;;  %s2476_s13 = smov 0  }
   0x7   :  { %s2478_s14 = smov 0   ;;  %s2480_s15 = smov 0  }
   0x8   :  { %s2482_s16 = smov 0   ;;  %s2484_s17 = smov 0  }
   0x9   :  { %s2486_s18 = smov 0   ;;  %s2488_s19 = smov 0  }
   0xa   :  { %s2490_s20 = smov 0   ;;  %s2492_s21 = smov 0  }
   0xb   :  { %s2494_s22 = smov 0  }
   0xc LB: > { %3544 = sst [smem:[#allocation9_spill]] %s2408_s15  ;;  %s2047_s23 = sadd.s32 4294967295, %s2436_s22   ;;  %s2436_s22 = sphi %s2494_s22, %s20_s22   ;;  %s2432_s21 = sphi %s2492_s21, %s3569_s21   ;;  %s2428_s20 = sphi %s2490_s20, %s3568_s20   ;;  %s2424_s19 = sphi %s2488_s19, %s3567_s19   ;;  %s2420_s18 = sphi %s2486_s18, %s3566_s18   ;;  %s2416_s17 = sphi %s2484_s17, %s3565_s17   ;;  %s2412_s16 = sphi %s2482_s16, %s3564_s16   ;;  %s2408_s15 = sphi %s2480_s15, %s3563_s15   ;;  %s2404_s14 = sphi %s2478_s14, %s3562_s14   ;;  %s2400_s13 = sphi %s2476_s13, %s3561_s13   ;;  %s2396_s12 = sphi %s2474_s12, %s3560_s12  }
   0xd   : > { %s2048_s24 = sadd.s32 4294967294, %s2436_s22   ;;  %s29_s25 = sadd.s32 1, %s2428_s20 }
   0xe   : > { %s32_s26 = sadd.s32 1, %s2432_s21  ;;  %p30_p0 = scmp.ge.s32.totalorder %s29_s25, 2 }
   0xf   : > { %s92_s27 = sadd.s32 1, %s2416_s17  ;;  %p102_p1 = scmp.ne.s32.totalorder %s2416_s17, %s2412_s16 }
  0x10   : > { %p2536_p2 = scmp.eq.s32.totalorder %s2047_s23, 3  ;;  %s3571_s25 = smov (%p30_p0, %s29_s25), 0 }
  0x11   : > { %s3573_s26 = smov (!%p30_p0, %s32_s26), %s2432_s21  ;;  %s88_s29 = ssub.s32 %s2428_s20, %s3571_s25 }
  0x12   : > { %p2547_p3 = por %p2536_p2, %p102_p1  ;;  %p34_p4 = scmp.ge.s32.totalorder %s3573_s26, 2 }
  0x13   : > { %p108_p5 = scmp.ne.s32.totalorder %s2412_s16, %s2408_s15  ;;  %p2553_p6 = scmp.eq.s32.totalorder %s2048_s24, 3 }
  0x14   : > { %s2051_s5 = sshll.u32 %s2432_s21, 1  ;;  %s3575_s26 = smov (%p34_p4, %s3573_s26), 0 }
  0x15   : > { %p2562_p7 = por %p2553_p6, %p108_p5  ;;  %s116_s7 = sadd.s32 %s2428_s20, %s2051_s5 }
  0x16   : > { %s87_s8 = ssub.s32 %s2432_s21, %s3575_s26  ;;  %s2052_s9 = sshll.u32 %s3575_s26, 1 }
  0x17   : > { %s89_s10 = sor.u32 %s88_s29, %s87_s8  ;;  %s118_s11 = sadd.s32 %s2052_s9, %s3571_s25 }
  0x18   : > { %p90_p8 = scmp.eq.s32.totalorder %s89_s10, 0  ;;  %s119_s23 = ssub.s32 %s116_s7, %s118_s11 }
  0x19   : > { %p120_p9 = scmp.eq.s32.totalorder %s119_s23, 0  ;;  %s122_s24 = sadd.s32 1, %s2404_s14 }
  0x1a   : > { %s2573_s15 = scalar_select %p90_p8, %s2416_s17, %s92_s27  }
  0x1b   : > { %s2576_s3 = scalar_select %p120_p9, %s2404_s14, %s122_s24  }
  0x1c   : > { %p132_p10 = scmp.ne.s32.totalorder %s2404_s14, %s2400_s13  ;;  %p138_p11 = scmp.ne.s32.totalorder %s2400_s13, %s2396_s12 }
  0x1d   : > { %p2055_p12 = scmp.ge.s32.totalorder %s2436_s22, 1  ;;  %p172_p13 = scmp.lt.s32.totalorder %s2436_s22, 5 }
  0x1e   : > { %p2586_p0 = por %p132_p10, %p2536_p2  ;;  %p2592_p1 = por %p138_p11, %p2553_p6 }
  0x1f   : > { %p173_p4 = pnand %p2055_p12, %p172_p13 }
  0x20   : > { %s2058_s27 = sshll.u32 (!%p173_p4), %s2424_s19, 1  ;;  %s3551_s0 = sld [smem:[#allocation10_spill]] (!%p173_p4)  ;;  %vm705_vm0 = vsmask.f32 (!%p173_p4), 3328  ;;  %v2439_v30 = vmov (!%p173_p4), 1983009808   ;;  %v3541_v32 = vlaneseq (!%p173_p4) }
  0x21   : > { %176 = sbr.rel (%p173_p4) target bundleno = 807 (0x327), region = 28  ;;  %s2598_s7 = sadd.s32 (!%p173_p4), %s2420_s18, %s2058_s27  ;;  %v233_v31 = vunpack.c.l.s4 (!%p173_p4), %v2439_v30  ;;  %vm706_vm1 = vsmask.f32 (!%p173_p4), 7440  ;;  %vm1295_vm3 = vcmask (!%p173_p4), 1042432   ;;  %vm1296_vm4 = vcmask (!%p173_p4), 1046532  }
  0x22   : > { %p205_p5 = scmp.lt.s32.totalorder (!%p173_p4), %s2598_s7, 3  ;;  %s2438_s18 = smov (!%p173_p4), 127   ;;  %v2683_v46 = vshrl.u32 (!%p173_p4), %v3541_v32, 7  ;;  %vm2696_vm2 = vmor (!%p173_p4), %vm705_vm0, %vm706_vm1  ;;  %vm351_vm6 = vcmask (!%p173_p4), 130048   ;;  %vm355_vm7 = vcmask (!%p173_p4), 261120   ;;  %vm358_vm8 = vcmask (!%p173_p4), 392192  }
  0x23   : > { %v234_v45 = vunpack.c.0.s8 (!%p173_p4), %v233_v31  ;;  %s2440_s19 = smov (!%p173_p4), 126   ;;  %vm2757_vm5 = vmor (!%p173_p4), %vm1295_vm3, %vm1296_vm4  ;;  %s2443_s11 = smov (!%p173_p4), 16   ;;  %vm361_vm9 = vcmask (!%p173_p4), 523264   ;;  %vm364_vm10 = vcmask (!%p173_p4), 654336   ;;  %vm367_vm11 = vcmask (!%p173_p4), 785408  }
  0x24   : > { %s2444_s23 = smov (!%p173_p4), 32   ;;  %s2445_s24 = smov (!%p173_p4), 48   ;;  %vm370_vm12 = vcmask (!%p173_p4), 916480   ;;  %vm2451_vm13 = vmmov (!%p173_p4), 0   ;;  %vm1838_vm14 = vcmask (!%p173_p4), 1043456   ;;  %vm1834_vm15 = vcmask (!%p173_p4), 588800  }
  0x25   : > { %s2446_s27 = smov (!%p173_p4), 64   ;;  %s2449_s9 = smov (!%p173_p4), 112  }
  0x28   : > { %s206_s28 = scalar_select %p205_p5, %s2598_s7, 3 }
  0x2a   : > { %s2146_s8 = sshll.u32 %s206_s28, 6  ;;  %s2447_s28 = smov 80  }
  0x2b   : > { %s2605_s4 = scalar_lea.vmem %s3551_s0, %s2146_s8  ;;  %s2448_s8 = smov 96  }
  0x2c   : > { %v2608_v0 = vld [vmem:[%s2605_s4 + $0x10] sm:$0xf]  ;;  %v2611_v1 = vld [vmem:[%s2605_s4] sm:$0xf]  ;;  %v2614_v2 = vld [vmem:[%s2605_s4 + $0x18] sm:$0xf] }
  0x2d   : > { %387 = vrot.lane.b32.xlu1 %v2608_v0, %s2438_s18  ;;  %383 = vrot.lane.b32.xlu0 %v2611_v1, %s2438_s18  ;;  %v2621_v3 = vld [vmem:[%s2605_s4 + $0x8] sm:$0xf]  ;;  %v2627_v5 = vld [vmem:[%s2605_s4 + $0x20] sm:$0xf]  ;;  %v709_v7 = vshrl.u32 %v2611_v1, 16  ;;  %v712_v10 = vshll.u32 %v2611_v1, 16 }
  0x2e   : > { %v2624_v4 = vld [vmem:[%s2605_s4 + $0x28] sm:$0xf]  ;;  %v2630_v6 = vld [vmem:[%s2605_s4 + $0x30] sm:$0xf]  ;;  %v723_v9 = vshrl.u32 %v2621_v3, 16  ;;  %v231_v11 = vcombine.low %v2611_v1, %v2627_v5  ;;  %v726_v13 = vshll.u32 %v2621_v3, 16 }
  0x2f   : > { %v265_v8 = vcombine.low %v2621_v3, %v2624_v4  ;;  %v239_v12 = vcombine.low %v2608_v0, %v2630_v6  ;;  %v751_v14 = vshrl.u32 %v2614_v2, 16  ;;  %v754_v15 = vshll.u32 %v2614_v2, 16  ;;  %v2649_v16 = vld [vmem:[%s2605_s4 + $0xc] sm:$0x1]  ;;  %v2653_v22 = vld [vmem:[%s2605_s4 + $0x4] sm:$0x1] }
  0x30   : > { %v725_v17 = vrot.slane %v723_v9, 4  ;;  %v711_v18 = vrot.slane %v709_v7, 4  ;;  %v714_v19 = vrot.slane %v712_v10, 5  ;;  %v737_v20 = vshrl.u32 %v2608_v0, 16  ;;  %v2661_v26 = vld [vmem:[%s2605_s4 + $0x1c] sm:$0x1] }
  0x31   : > { %389 = vrot.lane.b32.xlu1 %v2614_v2, %s2438_s18  ;;  %385 = vrot.lane.b32.xlu0 %v2621_v3, %s2438_s18  ;;  %v728_v21 = vrot.slane %v726_v13, 5  ;;  %v753_v23 = vrot.slane %v751_v14, 4  ;;  %v756_v24 = vrot.slane %v754_v15, 5  ;;  %v740_v25 = vshll.u32 %v2608_v0, 16  ;;  %v2664_v27 = vld [vmem:[%s2605_s4 + $0x38] sm:$0xf] }
  0x32   : > { %v739_v28 = vrot.slane %v737_v20, 4  ;;  %v732_v33 = vshll.u32 %v2649_v16, 16  ;;  %v718_v34 = vshll.u32 %v2653_v22, 16  ;;  %v2669_v35 = vld [vmem:[%s2605_s4 + $0x14] sm:$0x1]  ;;  %v715_v37 = vor.u32 %v714_v19, %v711_v18 }
  0x33   : > { %v742_v29 = vrot.slane %v740_v25, 5  ;;  %v729_v36 = vor.u32 %v728_v21, %v725_v17  ;;  %v757_v38 = vor.u32 %v756_v24, %v753_v23  ;;  %v760_v39 = vshll.u32 %v2661_v26, 16  ;;  %v2680_v44 = vld [vmem:[%s2605_s4 + $0x2c] sm:$0x1]  ;;  %v2686_v47 = vld [vmem:[%s2605_s4 + $0x24] sm:$0x1] }
  0x34   : > { %v779_v40 = vshrl.u32 %v2624_v4, 16  ;;  %v782_v41 = vshll.u32 %v2624_v4, 16  ;;  %v746_v43 = vshll.u32 %v2669_v35, 16  ;;  %v734_v48 = vrot.slane %v732_v33, 5  ;;  %v2712_v10 = vld [vmem:[%s2605_s4 + $0x3c] sm:$0x1] }
  0x35   : > { %393 = vrot.lane.b32.xlu1 %v2624_v4, %s2438_s18  ;;  %391 = vrot.lane.b32.xlu0 %v2627_v5, %s2438_s18  ;;  %v743_v42 = vor.u32 %v742_v29, %v739_v28  ;;  %v720_v49 = vrot.slane %v718_v34, 5  ;;  %v765_v50 = vshrl.u32 %v2627_v5, 16  ;;  %v768_v51 = vshll.u32 %v2627_v5, 16 }
  0x36   : > { %v730_v52 = vrot.slane %v729_v36, 4  ;;  %v716_v53 = vrot.slane %v715_v37, 4  ;;  %v758_v54 = vrot.slane %v757_v38, 4  ;;  %v762_v55 = vrot.slane %v760_v39, 5 }
  0x37   : > { %v2700_v57 = vrot.slane %v779_v40, 4  ;;  %v2702_v58 = vrot.slane %v782_v41, 5  ;;  %v788_v59 = vshll.u32 %v2680_v44, 16  ;;  %v774_v60 = vshll.u32 %v2686_v47, 16 }
  0x38   : > { %v744_v61 = vrot.slane %v743_v42, 4  ;;  %v748_v62 = vrot.slane %v746_v43, 5  ;;  %v807_v63 = vshrl.u32 %v2664_v27, 16  ;;  %v2707_v7 = vrot.slane %v765_v50, 4 }
  0x39   : > { %397 = vrot.lane.b32.xlu1 %v2664_v27, %s2438_s18  ;;  %395 = vrot.lane.b32.xlu0 %v2630_v6, %s2438_s18  ;;  %v2709_v9 = vrot.slane %v768_v51, 5  ;;  %v2441_v13 = vmov 1934713408   ;;  %v2718_v15 = vsel %vm2696_vm2, %v730_v52, %v734_v48  ;;  %v2722_v17 = vsel %vm2696_vm2, %v716_v53, %v720_v49 }
  0x3a   : > { %v2714_v14 = vunpack.c.l.s4 %v2441_v13  ;;  %v2725_v18 = vsub.s32 %v234_v45, %v2683_v46  ;;  %v2733_v19 = vsel %vm2696_vm2, %v758_v54, %v762_v55  ;;  %v785_v20 = vor.u32 %v2702_v58, %v2700_v57 }
  0x3b   : > { %v2737_v21 = vrot.slane %v788_v59, 5  ;;  %v2739_v23 = vrot.slane %v774_v60, 5  ;;  %v2743_v24 = vsel %vm2696_vm2, %v744_v61, %v748_v62  ;;  %v2745_v25 = vrot.slane %v807_v63, 4 }
  0x3c   : > { %v810_v28 = vshll.u32 %v2664_v27, 16  ;;  %v816_v29 = vshll.u32 %v2712_v10, 16  ;;  %v771_v30 = vor.u32 %v2709_v9, %v2707_v7  ;;  %v793_v31 = vshrl.u32 %v2630_v6, 16 }
  0x3d   : > { %546 = vrot.lane.b32.xlu1 %v2621_v3, %s2440_s19  ;;  %544 = vrot.lane.b32.xlu0 %v2611_v1, %s2440_s19  ;;  %v2104_v33 = vrot.slane %v2621_v3, 9  ;;  %v1304_v34 = vrot.slane %v2649_v16, 5  ;;  %v796_v36 = vshll.u32 %v2630_v6, 16  ;;  %v2103_v38 = vrot.slane %v2611_v1, 9 }
  0x3e   : > { %v1300_v39 = vrot.slane %v2653_v22, 5  ;;  %v2108_v40 = vrot.slane %v2624_v4, 9  ;;  %v2106_v16 = vrot.slane %v2614_v2, 9  ;;  %v1320_v41 = vrot.slane %v2680_v44, 5 }
  0x3f   : > { %v2107_v42 = vrot.slane %v2627_v5, 9  ;;  %v1316_v43 = vrot.slane %v2686_v47, 5  ;;  %v1312_v45 = vrot.slane %v2661_v26, 5  ;;  %v2105_v22 = vrot.slane %v2608_v0, 9  ;;  %v228_v26 = vld [vmem:[%s2605_s4 + $0x34] sm:$0x1] }
  0x40   : > { %v1308_v48 = vrot.slane %v2669_v35, 5  ;;  %v2110_v49 = vrot.slane %v2664_v27, 9  ;;  %v2778_v50 = vsel %vm2757_vm5, %v2104_v33, %v1304_v34  ;;  %v2782_v51 = vsel %vm2757_vm5, %v2108_v40, %v1320_v41  ;;  %s2452_s4 = smov [#allocation3]  }
  0x41   : > { %550 = vrot.lane.b32.xlu1 %v2614_v2, %s2440_s19  ;;  %548 = vrot.lane.b32.xlu0 %v2608_v0, %s2440_s19  ;;  %v1328_v44 = vrot.slane %v2712_v10, 5  ;;  %v2109_v47 = vrot.slane %v2630_v6, 9  ;;  %v812_v52 = vrot.slane %v810_v28, 5  ;;  %v2789_v53 = vsel %vm2757_vm5, %v2103_v38, %v1300_v39 }
  0x42   : > { %v1372_v35 = vcombine.low %v2778_v50, %v2782_v51  ;;  %v2795_v54 = vsel %vm2757_vm5, %v2107_v42, %v1316_v43  ;;  %v795_v55 = vrot.slane %v793_v31, 4  ;;  %v1324_v58 = vrot.slane %v228_v26, 5 }
  0x43   : > { %v1338_v57 = vcombine.low %v2789_v53, %v2795_v54  ;;  %v2807_v59 = vrot.slane %v231_v11, %v2725_v18  ;;  %v798_v60 = vrot.slane %v796_v36, 5  ;;  %v2811_v61 = vsel %vm2757_vm5, %v2106_v16, %v1312_v45 }
  0x44   : > { %v2815_v62 = vsel %vm2757_vm5, %v2105_v22, %v1308_v48  ;;  %v2819_v63 = vsel %vm2757_vm5, %v2110_v49, %v1328_v44  ;;  %v2822_v7 = vrot.slane %v1372_v35, %v2725_v18  ;;  %v2834_v11 = vrot.slane %v239_v12, %v2725_v18 }
  0x45   : > { %554 = vrot.lane.b32.xlu1 %v2624_v4, %s2440_s19  ;;  %552 = vrot.lane.b32.xlu0 %v2627_v5, %s2440_s19  ;;  %v1380_v1 = vcombine.low %v2811_v61, %v2819_v63  ;;  %v2828_v5 = vsel %vm2757_vm5, %v2109_v47, %v1324_v58  ;;  %v786_v9 = vrot.slane %v785_v20, 4  ;;  %v2837_v13 = vrot.slane %v1338_v57, %v2725_v18 }
  0x46   : > { %v1346_v28 = vcombine.low %v2815_v62, %v2828_v5  ;;  %v2845_v31 = vrot.slane %v265_v8, %v2725_v18  ;;  %v802_v0 = vshll.u32 %v228_v26, 16  ;;  %v247_v12 = vcombine.low %v2807_v59, %v2834_v11 }
  0x47   : > { %v273_v20 = vcombine.low %v2614_v2, %v2664_v27  ;;  %v772_v33 = vrot.slane %v771_v30, 4  ;;  %v813_v3 = vor.u32 %v812_v52, %v2745_v25  ;;  %v799_v4 = vor.u32 %v798_v60, %v795_v55 }
  0x48   : > { %v2860_v8 = vrot.slane %v1346_v28, %v2725_v18  ;;  %v251_v38 = vunpack.c.0.s8 %v2714_v14  ;;  %v791_v25 = vsel %vm2696_vm2, %v786_v9, %v2737_v21  ;;  %v818_v30 = vrot.slane %v816_v29, 5 }
  0x49   : > { %558 = vrot.lane.b32.xlu1 %v2664_v27, %s2440_s19  ;;  %556 = vrot.lane.b32.xlu0 %v2630_v6, %s2440_s19  ;;  %v2852_v6 = vrot.slane %v1380_v1, %v2725_v18  ;;  %v2867_v37 = vrot.slane %v273_v20, %v2725_v18  ;;  %v777_v39 = vsel %vm2696_vm2, %v772_v33, %v2739_v23  ;;  %v814_v40 = vrot.slane %v813_v3, 4 }
  0x4a   : > { %v1354_v2 = vcombine.low %v2837_v13, %v2860_v8  ;;  %v1355_v27 = vcombine.high %v2837_v13, %v2860_v8  ;;  %v800_v16 = vrot.slane %v799_v4, 4  ;;  %v804_v41 = vrot.slane %v802_v0, 5 }
  0x4b   : > { %v1388_v34 = vcombine.low %v2822_v7, %v2852_v6  ;;  %v1389_v36 = vcombine.high %v2822_v7, %v2852_v6  ;;  %v281_v14 = vcombine.low %v2845_v31, %v2867_v37  ;;  %v2889_v42 = vsub.s32 %v251_v38, %v2683_v46 }
  0x4c   : > { %v248_v43 = vcombine.high %v2807_v59, %v2834_v11  ;;  %v282_v10 = vcombine.high %v2845_v31, %v2867_v37  ;;  %v819_v21 = vsel %vm2696_vm2, %v814_v40, %v818_v30  ;;  %v805_v23 = vsel %vm2696_vm2, %v800_v16, %v804_v41 }
  0x4d   : > { %967 = vrot.lane.b32.xlu1 %v2718_v15, %s2438_s18  ;;  %965 = vrot.lane.b32.xlu0 %v2722_v17, %s2438_s18  ;;  %v2442_v44 = vmov 0   ;;  %v862_v58 = vcombine.low %v2718_v15, %v791_v25  ;;  %v828_v60 = vcombine.low %v2722_v17, %v777_v39  ;;  %v870_v1 = vcombine.low %v2733_v19, %v819_v21 }
  0x4e   : > { %v262_v29 = vrot.slane %v248_v43, %v2889_v42  ;;  %v296_v45 = vrot.slane %v282_v10, %v2889_v42  ;;  %v836_v9 = vcombine.low %v2743_v24, %v805_v23  ;;  %v2979_v10 = vrot.slane %v247_v12, %v2889_v42 }
  0x4f   : > { %v869_v28 = vrot.slane %v862_v58, %v2725_v18  ;;  %v835_v0 = vrot.slane %v828_v60, %v2725_v18  ;;  %v877_v20 = vrot.slane %v870_v1, %v2725_v18 }
  0x50   : > { %v2903_v22 = vpack.i.b16 %v296_v45, %v262_v29  ;;  %v314_v48 = vshrl.u32 %v262_v29, 16  ;;  %v315_v49 = vshrl.u32 %v296_v45, 16  ;;  %v264_v47 = vcombine.high %v262_v29, %v2442_v44 }
  0x51   : > { %971 = vrot.lane.b32.xlu1 %v2733_v19, %s2438_s18  ;;  %969 = vrot.lane.b32.xlu0 %v2743_v24, %s2438_s18  ;;  %v298_v52 = vcombine.high %v296_v45, %v2442_v44  ;;  %v879_v33 = vcombine.high %v869_v28, %v877_v20  ;;  %v878_v40 = vcombine.low %v869_v28, %v877_v20 }
  0x52   : > { %v2909_v26 = vpack.i.b16 %v315_v49, %v314_v48  ;;  %v320_v35 = vshrl.u32 %v264_v47, 16  ;;  %v263_v12 = vcombine.high %v2979_v10, %v2442_v44 }
  0x53   : > { %v2911_v56 = vpack.i.b16 %v298_v52, %v264_v47  ;;  %v321_v55 = vshrl.u32 %v298_v52, 16  ;;  %v2966_v41 = vrot.slane %v878_v40, %v2889_v42 }
  0x54   : > { %v308_v47 = vshrl.u32 %v263_v12, 16 }
  0x55   : > { %975 = vrot.lane.b32.xlu1 %v791_v25, %s2438_s18  ;;  %973 = vrot.lane.b32.xlu0 %v777_v39, %s2438_s18  ;;  %v2917_v57 = vpack.i.b16 %v321_v55, %v320_v35  ;;  %v900_v29 = vshrl.u32 %v2966_v41, 16  ;;  %v894_v31 = vcombine.high %v2966_v41, %v2442_v44 }
  0x57   : > { %v906_v49 = vshrl.u32 %v894_v31, 16 }
  0x59   : > { %979 = vrot.lane.b32.xlu1 %v819_v21, %s2438_s18  ;;  %977 = vrot.lane.b32.xlu0 %v805_v23, %s2438_s18 }
  0x5d   : > { %1128 = vrot.lane.b32.xlu1 %v2718_v15, %s2440_s19  ;;  %1126 = vrot.lane.b32.xlu0 %v2722_v17, %s2440_s19  ;;  %v843_v15 = vrot.slane %v836_v9, %v2725_v18 }
  0x5f   : > { %v845_v17 = vcombine.high %v835_v0, %v843_v15  ;;  %v844_v16 = vcombine.low %v835_v0, %v843_v15  ;;  %v2064_v15 = vcombine.low %v2903_v22, %v2903_v22  ;;  %v2066_v22 = vcombine.low %v2911_v56, %v2911_v56 }
  0x61   : > { %1132 = vrot.lane.b32.xlu1 %v2733_v19, %s2440_s19  ;;  %1130 = vrot.lane.b32.xlu0 %v2743_v24, %s2440_s19  ;;  %v2936_v19 = vrot.slane %v845_v17, %v2889_v42  ;;  %v2939_v24 = vrot.slane %v879_v33, %v2889_v42  ;;  %v2969_v43 = vrot.slane %v844_v16, %v2889_v42 }
  0x63   : > { %v861_v3 = vcombine.high %v2936_v19, %v2442_v44  ;;  %v895_v4 = vcombine.high %v2939_v24, %v2442_v44  ;;  %v860_v11 = vcombine.high %v2969_v43, %v2442_v44  ;;  %v910_v1 = vpack.i.b16 %v2939_v24, %v2936_v19 }
  0x64   : > { %v912_v9 = vshrl.u32 %v2939_v24, 16 }
  0x65   : > { %1136 = vrot.lane.b32.xlu1 %v791_v25, %s2440_s19  ;;  %1134 = vrot.lane.b32.xlu0 %v777_v39, %s2440_s19  ;;  %v2949_v38 = vpack.i.b16 %v895_v4, %v861_v3  ;;  %v917_v25 = vshrl.u32 %v861_v3, 16  ;;  %v918_v30 = vshrl.u32 %v895_v4, 16  ;;  %v905_v48 = vshrl.u32 %v860_v11, 16 }
  0x66   : > { %v2085_v0 = vcombine.low %v910_v1, %v910_v1  ;;  %v2065_v3 = vcombine.low %v2909_v26, %v2909_v26  ;;  %v2067_v26 = vcombine.low %v2917_v57, %v2917_v57 }
  0x67   : > { %v2959_v39 = vpack.i.b16 %v918_v30, %v917_v25 }
  0x69   : > { %1140 = vrot.lane.b32.xlu1 %v819_v21, %s2440_s19  ;;  %1138 = vrot.lane.b32.xlu0 %v805_v23, %s2440_s19  ;;  %v2985_v21 = vrot.slane %v281_v14, %v2889_v42  ;;  %v899_v23 = vshrl.u32 %v2969_v43, 16  ;;  %v904_v14 = vpack.i.b16 %v894_v31, %v860_v11 }
  0x6b   : > { %v901_v59 = vpack.i.b16 %v900_v29, %v899_v23  ;;  %v2083_v58 = vcombine.low %v904_v14, %v904_v14 }
  0x6d   : > { %1477 = vrot.lane.b32.xlu1 %v2778_v50, %s2438_s18  ;;  %1475 = vrot.lane.b32.xlu0 %v2789_v53, %s2438_s18  ;;  %v2082_v37 = vcombine.low %v901_v59, %v901_v59 }
  0x71   : > { %1481 = vrot.lane.b32.xlu1 %v2811_v61, %s2438_s18  ;;  %1479 = vrot.lane.b32.xlu0 %v2815_v62, %s2438_s18 }
  0x75   : > { %1485 = vrot.lane.b32.xlu1 %v2782_v51, %s2438_s18  ;;  %1483 = vrot.lane.b32.xlu0 %v2795_v54, %s2438_s18 }
  0x79   : > { %1489 = vrot.lane.b32.xlu1 %v2819_v63, %s2438_s18  ;;  %1487 = vrot.lane.b32.xlu0 %v2828_v5, %s2438_s18  ;;  %s193_s18 = sand.u32 1, %s2412_s16  }
  0x7d   : > { %1638 = vrot.lane.b32.xlu1 %v2778_v50, %s2440_s19  ;;  %1636 = vrot.lane.b32.xlu0 %v2789_v53, %s2440_s19  ;;  %v302_v50 = vshrl.u32 %v2979_v10, 16  ;;  %v303_v53 = vshrl.u32 %v2985_v21, 16 }
  0x81   : > { %1642 = vrot.lane.b32.xlu1 %v2811_v61, %s2440_s19  ;;  %1640 = vrot.lane.b32.xlu0 %v2815_v62, %s2440_s19  ;;  %v297_v61 = vcombine.high %v2985_v21, %v2442_v44  ;;  %v304_v62 = vpack.i.b16 %v303_v53, %v302_v50 }
  0x83   : > { %v307_v45 = vpack.i.b16 %v297_v61, %v263_v12  ;;  %v2061_v52 = vcombine.low %v304_v62, %v304_v62  ;;  %v309_v35 = vshrl.u32 %v297_v61, 16 }
  0x85   : > { %1646 = vrot.lane.b32.xlu1 %v2782_v51, %s2440_s19  ;;  %1644 = vrot.lane.b32.xlu0 %v2795_v54, %s2440_s19  ;;  %v1369_v51 = vrot.slane %v1355_v27, %v2889_v42  ;;  %v1403_v54 = vrot.slane %v1389_v36, %v2889_v42  ;;  %v310_v60 = vpack.i.b16 %v309_v35, %v308_v47  ;;  %v911_v27 = vshrl.u32 %v2936_v19, 16 }
  0x87   : > { %v3019_v55 = vpack.i.b16 %v1403_v54, %v1369_v51  ;;  %v2063_v28 = vcombine.low %v310_v60, %v310_v60  ;;  %v913_v20 = vpack.i.b16 %v912_v9, %v911_v27  ;;  %v1371_v33 = vcombine.high %v1369_v51, %v2442_v44 }
  0x88   : > { %v1405_v17 = vcombine.high %v1403_v54, %v2442_v44  ;;  %v1421_v4 = vshrl.u32 %v1369_v51, 16  ;;  %v1422_v25 = vshrl.u32 %v1403_v54, 16 }
  0x89   : > { %1650 = vrot.lane.b32.xlu1 %v2819_v63, %s2440_s19  ;;  %1648 = vrot.lane.b32.xlu0 %v2828_v5, %s2440_s19  ;;  %v2062_v63 = vcombine.low %v307_v45, %v307_v45  ;;  %v907_v5 = vpack.i.b16 %v906_v49, %v905_v48  ;;  %v2086_v24 = vcombine.low %v913_v20, %v913_v20  ;;  %v1427_v59 = vshrl.u32 %v1371_v33, 16  ;;  %s2056_s19 = sshll.u32 %s193_s18, 3 }
  0x8a   : > { %v3035_v19 = vpack.i.b16 %v1405_v17, %v1371_v33  ;;  %v3045_v30 = vpack.i.b16 %v1422_v25, %v1421_v4  ;;  %v1428_v11 = vshrl.u32 %v1405_v17, 16 }
  0x8b   : > { %v2084_v36 = vcombine.low %v907_v5, %v907_v5 }
  0x8c   : > { %v3051_v12 = vpack.i.b16 %v1428_v11, %v1427_v59 }
  0x8d   : > { %922 = vrot.lane.b32.xlu1 %v2082_v37, %s2443_s11  ;;  %325 = vrot.lane.b32.xlu0 %v2061_v52, %s2443_s11 }
  0x91   : > { %926 = vrot.lane.b32.xlu1 %v2083_v58, %s2444_s23  ;;  %329 = vrot.lane.b32.xlu0 %v2062_v63, %s2444_s23 }
  0x95   : > { %930 = vrot.lane.b32.xlu1 %v2084_v36, %s2445_s24  ;;  %333 = vrot.lane.b32.xlu0 %v2063_v28, %s2445_s24 }
  0x99   : > { %934 = vrot.lane.b32.xlu1 %v2085_v0, %s2446_s27  ;;  %337 = vrot.lane.b32.xlu0 %v2064_v15, %s2446_s27 }
  0x9d   : > { %938 = vrot.lane.b32.xlu1 %v2086_v24, %s2447_s28  ;;  %341 = vrot.lane.b32.xlu0 %v2065_v3, %s2447_s28 }
  0x9f   : > { %v388_v40 = vpop.permute.xlu1 %387  ;;  %v384_v16 = vpop.permute.xlu0 %383 }
  0xa1   : > { %345 = vrot.lane.b32.xlu0 %v2066_v22, %s2448_s8 }
  0xa3   : > { %v390_v23 = vpop.permute.xlu1 %389  ;;  %v386_v29 = vpop.permute.xlu0 %385 }
  0xa5   : > { %349 = vrot.lane.b32.xlu0 %v2067_v26, %s2449_s9 }
  0xa7   : > { %v394_v50 = vpop.permute.xlu1 %393  ;;  %v392_v53 = vpop.permute.xlu0 %391 }
  0xa8   : > { %v441_v56 = vcombine.low %v386_v29, %v394_v50  ;;  %v407_v31 = vcombine.low %v384_v16, %v392_v53 }
  0xaa   : > { %v448_v45 = vrot.slane %v441_v56, %v2725_v18  ;;  %v414_v57 = vrot.slane %v407_v31, %v2725_v18 }
  0xab   : > { %v398_v61 = vpop.permute.xlu1 %397  ;;  %v396_v62 = vpop.permute.xlu0 %395 }
  0xac   : > { %v449_v37 = vcombine.low %v390_v23, %v398_v61  ;;  %v415_v14 = vcombine.low %v388_v40, %v396_v62 }
  0xae   : > { %v456_v48 = vrot.slane %v449_v37, %v2725_v18  ;;  %v422_v49 = vrot.slane %v415_v14, %v2725_v18 }
  0xaf   : > { %v547_v47 = vpop.permute.xlu1 %546  ;;  %v545_v52 = vpop.permute.xlu0 %544 }
  0xb0   : > { %v457_v35 = vcombine.low %v448_v45, %v456_v48  ;;  %v458_v51 = vcombine.high %v448_v45, %v456_v48  ;;  %v423_v54 = vcombine.low %v414_v57, %v422_v49  ;;  %v424_v58 = vcombine.high %v414_v57, %v422_v49 }
  0xb2   : > { %v3058_v63 = vrot.slane %v457_v35, %v2889_v42  ;;  %v472_v5 = vrot.slane %v458_v51, %v2889_v42  ;;  %v3062_v60 = vrot.slane %v423_v54, %v2889_v42  ;;  %v438_v1 = vrot.slane %v424_v58, %v2889_v42 }
  0xb3   : > { %v551_v27 = vpop.permute.xlu1 %550  ;;  %v549_v9 = vpop.permute.xlu0 %548 }
  0xb4   : > { %v489_v36 = vpack.i.b16 %v472_v5, %v438_v1  ;;  %v478_v28 = vshrl.u32 %v3062_v60, 16  ;;  %v479_v0 = vshrl.u32 %v3058_v63, 16  ;;  %v439_v20 = vcombine.high %v3062_v60, %v2442_v44 }
  0xb5   : > { %v473_v15 = vcombine.high %v3058_v63, %v2442_v44  ;;  %v490_v25 = vshrl.u32 %v438_v1, 16  ;;  %v491_v22 = vshrl.u32 %v472_v5, 16  ;;  %v477_v23 = vpack.i.b16 %v3058_v63, %v3062_v60 }
  0xb6   : > { %v2071_v33 = vcombine.low %v489_v36, %v489_v36  ;;  %v480_v17 = vpack.i.b16 %v479_v0, %v478_v28  ;;  %v440_v31 = vcombine.high %v438_v1, %v2442_v44  ;;  %v474_v61 = vcombine.high %v472_v5, %v2442_v44 }
  0xb7   : > { %v555_v24 = vpop.permute.xlu1 %554  ;;  %v553_v3 = vpop.permute.xlu0 %552  ;;  %v483_v4 = vpack.i.b16 %v473_v15, %v439_v20  ;;  %v492_v56 = vpack.i.b16 %v491_v22, %v490_v25  ;;  %v484_v58 = vshrl.u32 %v439_v20, 16  ;;  %v485_v5 = vshrl.u32 %v473_v15, 16 }
  0xb8   : > { %513 = vrot.lane.b32.xlu1 %v2071_v33, %s2446_s27  ;;  %v602_v40 = vcombine.low %v547_v47, %v555_v24  ;;  %v568_v16 = vcombine.low %v545_v52, %v553_v3  ;;  %v2068_v26 = vcombine.low %v480_v17, %v480_v17  ;;  %v495_v54 = vpack.i.b16 %v474_v61, %v440_v31 }
  0xb9   : > { %v2069_v11 = vcombine.low %v483_v4, %v483_v4  ;;  %v2072_v51 = vcombine.low %v492_v56, %v492_v56  ;;  %v486_v17 = vpack.i.b16 %v485_v5, %v484_v58  ;;  %v496_v24 = vshrl.u32 %v440_v31, 16 }
  0xba   : > { %v609_v62 = vrot.slane %v602_v40, %v2725_v18  ;;  %v575_v37 = vrot.slane %v568_v16, %v2725_v18  ;;  %v497_v3 = vshrl.u32 %v474_v61, 16  ;;  %v2073_v4 = vcombine.low %v495_v54, %v495_v54 }
  0xbb   : > { %v559_v29 = vpop.permute.xlu1 %558  ;;  %v557_v50 = vpop.permute.xlu0 %556  ;;  %v2450_v54 = vmov 0.0  }
  0xbc   : > { %v610_v53 = vcombine.low %v551_v27, %v559_v29  ;;  %v576_v59 = vcombine.low %v549_v9, %v557_v50  ;;  %501 = vrot.lane.b32.xlu1 %v2068_v26, %s2443_s11  ;;  %v2070_v50 = vcombine.low %v486_v17, %v486_v17  ;;  %2153 = vmatprep.subr.bf16.mxu0 %v2450_v54 }
  0xbd   : > { %2163 = vmatprep.mubr.msk.bf16.mxu0 %vm2451_vm13, %v2450_v54 }
  0xbe   : > { %v617_v14 = vrot.slane %v610_v53, %v2725_v18  ;;  %v583_v45 = vrot.slane %v576_v59, %v2725_v18  ;;  %v498_v53 = vpack.i.b16 %v497_v3, %v496_v24 }
  0xbf   : > { %v968_v57 = vpop.permute.xlu1 %967  ;;  %v966_v48 = vpop.permute.xlu0 %965 }
  0xc0   : > { %v618_v49 = vcombine.low %v609_v62, %v617_v14  ;;  %v619_v47 = vcombine.high %v609_v62, %v617_v14  ;;  %v584_v52 = vcombine.low %v575_v37, %v583_v45  ;;  %v585_v35 = vcombine.high %v575_v37, %v583_v45  ;;  %505 = vrot.lane.b32.xlu1 %v2069_v11, %s2444_s23 }
  0xc2   : > { %v3083_v1 = vrot.slane %v618_v49, %v2889_v42  ;;  %v3086_v27 = vrot.slane %v619_v47, %v2889_v42  ;;  %v3089_v9 = vrot.slane %v584_v52, %v2889_v42  ;;  %v3092_v36 = vrot.slane %v585_v35, %v2889_v42 }
  0xc3   : > { %v972_v28 = vpop.permute.xlu1 %971  ;;  %v970_v0 = vpop.permute.xlu0 %969  ;;  %v2074_v52 = vcombine.low %v498_v53, %v498_v53 }
  0xc4   : > { %517 = vrot.lane.b32.xlu1 %v2072_v51, %s2447_s28  ;;  %v650_v20 = vpack.i.b16 %v3086_v27, %v3092_v36  ;;  %v639_v15 = vshrl.u32 %v3089_v9, 16  ;;  %v640_v33 = vshrl.u32 %v3083_v1, 16  ;;  %v600_v26 = vcombine.high %v3089_v9, %v2442_v44 }
  0xc5   : > { %v634_v29 = vcombine.high %v3083_v1, %v2442_v44  ;;  %v638_v31 = vpack.i.b16 %v3083_v1, %v3089_v9  ;;  %v651_v14 = vshrl.u32 %v3092_v36, 16  ;;  %v652_v45 = vshrl.u32 %v3086_v27, 16 }
  0xc6   : > { %v2078_v25 = vcombine.low %v650_v20, %v650_v20  ;;  %v641_v22 = vpack.i.b16 %v640_v33, %v639_v15  ;;  %v645_v20 = vshrl.u32 %v600_v26, 16 }
  0xc7   : > { %v976_v40 = vpop.permute.xlu1 %975  ;;  %v974_v16 = vpop.permute.xlu0 %973  ;;  %v644_v37 = vpack.i.b16 %v634_v29, %v600_v26  ;;  %v646_v15 = vshrl.u32 %v634_v29, 16 }
  0xc8   : > { %521 = vrot.lane.b32.xlu1 %v2073_v4, %s2448_s8  ;;  %674 = vrot.lane.b32.xlu0 %v2078_v25, %s2446_s27  ;;  %v1023_v59 = vcombine.low %v968_v57, %v976_v40  ;;  %v989_v11 = vcombine.low %v966_v48, %v974_v16  ;;  %v2075_v56 = vcombine.low %v641_v22, %v641_v22 }
  0xc9   : > { %v647_v40 = vpack.i.b16 %v646_v15, %v645_v20 }
  0xca   : > { %v3112_v57 = vrot.slane %v1023_v59, %v2725_v18  ;;  %v3115_v48 = vrot.slane %v989_v11, %v2725_v18  ;;  %v601_v11 = vcombine.high %v3092_v36, %v2442_v44 }
  0xcb   : > { %v980_v61 = vpop.permute.xlu1 %979  ;;  %v978_v62 = vpop.permute.xlu0 %977  ;;  %v2077_v53 = vcombine.low %v647_v40, %v647_v40 }
  0xcc   : > { %v1031_v49 = vcombine.low %v972_v28, %v980_v61  ;;  %v997_v47 = vcombine.low %v970_v0, %v978_v62  ;;  %509 = vrot.lane.b32.xlu1 %v2070_v50, %s2445_s24  ;;  %662 = vrot.lane.b32.xlu0 %v2075_v56, %s2443_s11  ;;  %v2076_v28 = vcombine.low %v644_v37, %v644_v37 }
  0xcd   : > { %v653_v0 = vpack.i.b16 %v652_v45, %v651_v14  ;;  %v635_v56 = vcombine.high %v3086_v27, %v2442_v44  ;;  %v657_v27 = vshrl.u32 %v601_v11, 16 }
  0xce   : > { %v3118_v35 = vrot.slane %v1031_v49, %v2725_v18  ;;  %v3121_v51 = vrot.slane %v997_v47, %v2725_v18 }
  0xcf   : > { %v1129_v58 = vpop.permute.xlu1 %1128  ;;  %v1127_v5 = vpop.permute.xlu0 %1126  ;;  %v2079_v22 = vcombine.low %v653_v0, %v653_v0  ;;  %v656_v47 = vpack.i.b16 %v635_v56, %v601_v11 }
  0xd0   : > { %v1039_v33 = vcombine.low %v3112_v57, %v3118_v35  ;;  %v1005_v17 = vcombine.low %v3115_v48, %v3121_v51  ;;  %525 = vrot.lane.b32.xlu1 %v2074_v52, %s2449_s9  ;;  %666 = vrot.lane.b32.xlu0 %v2076_v28, %s2444_s23 }
  0xd2   : > { %v3131_v24 = vrot.slane %v1039_v33, %v2889_v42  ;;  %v3134_v3 = vrot.slane %v1005_v17, %v2889_v42 }
  0xd3   : > { %v1133_v4 = vpop.permute.xlu1 %1132  ;;  %v1131_v25 = vpop.permute.xlu0 %1130 }
  0xd4   : > { %v1060_v16 = vshrl.u32 %v3134_v3, 16  ;;  %v1061_v26 = vshrl.u32 %v3131_v24, 16  ;;  %678 = vrot.lane.b32.xlu0 %v2079_v22, %s2447_s28  ;;  %v1059_v37 = vpack.i.b16 %v3131_v24, %v3134_v3  ;;  %v1021_v52 = vcombine.high %v3134_v3, %v2442_v44 }
  0xd5   : > { %v1055_v36 = vcombine.high %v3131_v24, %v2442_v44 }
  0xd6   : > { %v1062_v59 = vpack.i.b16 %v1061_v26, %v1060_v16  ;;  %v1040_v26 = vcombine.high %v3112_v57, %v3118_v35 }
  0xd7   : > { %v1137_v29 = vpop.permute.xlu1 %1136  ;;  %v1135_v50 = vpop.permute.xlu0 %1134 }
  0xd8   : > { %670 = vrot.lane.b32.xlu0 %v2077_v53, %s2445_s24  ;;  %v1184_v61 = vcombine.low %v1129_v58, %v1137_v29  ;;  %v1150_v62 = vcombine.low %v1127_v5, %v1135_v50  ;;  %v2089_v49 = vcombine.low %v1062_v59, %v1062_v59  ;;  %v658_v58 = vshrl.u32 %v635_v56, 16 }
  0xd9   : > { %v1006_v59 = vcombine.high %v3115_v48, %v3121_v51  ;;  %v1054_v35 = vrot.slane %v1040_v26, %v2889_v42 }
  0xda   : > { %v3152_v5 = vrot.slane %v1184_v61, %v2725_v18  ;;  %v3155_v20 = vrot.slane %v1150_v62, %v2725_v18  ;;  %v659_v53 = vpack.i.b16 %v658_v58, %v657_v27  ;;  %v1066_v62 = vshrl.u32 %v1021_v52, 16 }
  0xdb   : > { %v1141_v14 = vpop.permute.xlu1 %1140  ;;  %v1139_v45 = vpop.permute.xlu0 %1138  ;;  %v3191_v58 = vrot.slane %v1388_v34, %v2889_v42  ;;  %v1073_v13 = vshrl.u32 %v1054_v35, 16 }
  0xdc   : > { %v1192_v28 = vcombine.low %v1133_v4, %v1141_v14  ;;  %v1158_v0 = vcombine.low %v1131_v25, %v1139_v45  ;;  %1083 = vrot.lane.b32.xlu0 %v2089_v49, %s2443_s11  ;;  %v2080_v4 = vcombine.low %v656_v47, %v656_v47  ;;  %v1065_v25 = vpack.i.b16 %v1055_v36, %v1021_v52 }
  0xdd   : > { %v1067_v14 = vshrl.u32 %v1055_v36, 16  ;;  %v1020_v47 = vrot.slane %v1006_v59, %v2889_v42  ;;  %v2081_v27 = vcombine.low %v659_v53, %v659_v53 }
  0xde   : > { %v3158_v15 = vrot.slane %v1192_v28, %v2725_v18  ;;  %v3161_v33 = vrot.slane %v1158_v0, %v2725_v18  ;;  %v2090_v61 = vcombine.low %v1065_v25, %v1065_v25 }
  0xdf   : > { %v1478_v17 = vpop.permute.xlu1 %1477  ;;  %v1476_v22 = vpop.permute.xlu0 %1475  ;;  %v1068_v48 = vpack.i.b16 %v1067_v14, %v1066_v62  ;;  %v1071_v53 = vpack.i.b16 %v1054_v35, %v1020_v47  ;;  %v1072_v59 = vshrl.u32 %v1020_v47, 16 }
  0xe0   : > { %v1200_v40 = vcombine.low %v3152_v5, %v3158_v15  ;;  %v1166_v16 = vcombine.low %v3155_v20, %v3161_v33  ;;  %682 = vrot.lane.b32.xlu0 %v2080_v4, %s2448_s8  ;;  %v3197_v4 = vrot.slane %v1354_v2, %v2889_v42 }
  0xe1   : > { %v2091_v26 = vcombine.low %v1068_v48, %v1068_v48 }
  0xe2   : > { %v3171_v29 = vrot.slane %v1200_v40, %v2889_v42  ;;  %v3174_v50 = vrot.slane %v1166_v16, %v2889_v42  ;;  %v2087_v16 = vcombine.low %v2949_v38, %v2949_v38 }
  0xe3   : > { %v1482_v11 = vpop.permute.xlu1 %1481  ;;  %v1480_v56 = vpop.permute.xlu0 %1479 }
  0xe4   : > { %v1221_v45 = vshrl.u32 %v3174_v50, 16  ;;  %v1222_v49 = vshrl.u32 %v3171_v29, 16  ;;  %1087 = vrot.lane.b32.xlu0 %v2090_v61, %s2444_s23  ;;  %v1182_v52 = vcombine.high %v3174_v50, %v2442_v44  ;;  %v1216_v36 = vcombine.high %v3171_v29, %v2442_v44 }
  0xe5   : > { %v1220_v7 = vpack.i.b16 %v3171_v29, %v3174_v50 }
  0xe6   : > { %v1223_v57 = vpack.i.b16 %v1222_v49, %v1221_v45  ;;  %v1226_v61 = vpack.i.b16 %v1216_v36, %v1182_v52  ;;  %v2092_v49 = vcombine.low %v1071_v53, %v1071_v53  ;;  %v1227_v48 = vshrl.u32 %v1182_v52, 16 }
  0xe7   : > { %v1486_v28 = vpop.permute.xlu1 %1485  ;;  %v1484_v0 = vpop.permute.xlu0 %1483  ;;  %v1370_v53 = vcombine.high %v3197_v4, %v2442_v44 }
  0xe8   : > { %v2096_v51 = vcombine.low %v1223_v57, %v1223_v57  ;;  %686 = vrot.lane.b32.xlu0 %v2081_v27, %s2449_s9  ;;  %v1533_v25 = vcombine.low %v1478_v17, %v1486_v28  ;;  %v1499_v40 = vcombine.low %v1476_v22, %v1484_v0  ;;  %v1409_v17 = vshrl.u32 %v3197_v4, 16 }
  0xe9   : > { %v1410_v22 = vshrl.u32 %v3191_v58, 16  ;;  %v1074_v0 = vpack.i.b16 %v1073_v13, %v1072_v59  ;;  %v2097_v27 = vcombine.low %v1226_v61, %v1226_v61  ;;  %v1404_v59 = vcombine.high %v3191_v58, %v2442_v44 }
  0xea   : > { %1244 = vrot.lane.b32.xlu1 %v2096_v51, %s2443_s11  ;;  %v3209_v38 = vrot.slane %v1533_v25, %v2725_v18  ;;  %v3212_v62 = vrot.slane %v1499_v40, %v2725_v18  ;;  %v1228_v51 = vshrl.u32 %v1216_v36, 16  ;;  %v2088_v25 = vcombine.low %v2959_v39, %v2959_v39 }
  0xeb   : > { %v1490_v6 = vpop.permute.xlu1 %1489  ;;  %v1488_v34 = vpop.permute.xlu0 %1487  ;;  %v1411_v40 = vpack.i.b16 %v1410_v22, %v1409_v17  ;;  %v2093_v36 = vcombine.low %v1074_v0, %v1074_v0  ;;  %v1414_v0 = vpack.i.b16 %v1404_v59, %v1370_v53 }
  0xec   : > { %v1541_v8 = vcombine.low %v1482_v11, %v1490_v6  ;;  %v1507_v2 = vcombine.low %v1480_v56, %v1488_v34  ;;  %1091 = vrot.lane.b32.xlu0 %v2091_v26, %s2445_s24  ;;  %v1201_v11 = vcombine.high %v3152_v5, %v3158_v15  ;;  %v1167_v56 = vcombine.high %v3155_v20, %v3161_v33 }
  0xed   : > { %v1022_v20 = vcombine.high %v1020_v47, %v2442_v44  ;;  %v1056_v15 = vcombine.high %v1054_v35, %v2442_v44  ;;  %v1229_v34 = vpack.i.b16 %v1228_v51, %v1227_v48  ;;  %v2111_v26 = vcombine.low %v1411_v40, %v1411_v40 }
  0xee   : > { %v3215_v14 = vrot.slane %v1541_v8, %v2725_v18  ;;  %v3218_v45 = vrot.slane %v1507_v2, %v2725_v18  ;;  %942 = vrot.lane.b32.xlu1 %v2087_v16, %s2448_s8  ;;  %v1215_v33 = vrot.slane %v1201_v11, %v2889_v42  ;;  %v1181_v52 = vrot.slane %v1167_v56, %v2889_v42 }
  0xef   : > { %v1639_v57 = vpop.permute.xlu1 %1638  ;;  %v1637_v28 = vpop.permute.xlu0 %1636  ;;  %v1077_v13 = vpack.i.b16 %v1056_v15, %v1022_v20  ;;  %v2098_v11 = vcombine.low %v1229_v34, %v1229_v34  ;;  %v1078_v48 = vshrl.u32 %v1022_v20, 16  ;;  %v1079_v51 = vshrl.u32 %v1056_v15, 16 }
  0xf0   : > { %1095 = vrot.lane.b32.xlu0 %v2092_v49, %s2446_s27  ;;  %v1549_v16 = vcombine.low %v3209_v38, %v3215_v14  ;;  %v1515_v5 = vcombine.low %v3212_v62, %v3218_v45  ;;  %v1232_v61 = vpack.i.b16 %v1215_v33, %v1181_v52  ;;  %v1233_v17 = vshrl.u32 %v1181_v52, 16 }
  0xf1   : > { %v1234_v22 = vshrl.u32 %v1215_v33, 16  ;;  %v2112_v15 = vcombine.low %v1414_v0, %v1414_v0 }
  0xf2   : > { %1248 = vrot.lane.b32.xlu1 %v2097_v27, %s2444_s23  ;;  %v3243_v47 = vrot.slane %v1549_v16, %v2889_v42  ;;  %v3246_v35 = vrot.slane %v1515_v5, %v2889_v42  ;;  %v2094_v27 = vcombine.low %v1077_v13, %v1077_v13  ;;  %v2099_v40 = vcombine.low %v1232_v61, %v1232_v61 }
  0xf3   : > { %v1643_v6 = vpop.permute.xlu1 %1642  ;;  %v1641_v39 = vpop.permute.xlu0 %1640  ;;  %v1415_v13 = vshrl.u32 %v1370_v53, 16 }
  0xf4   : > { %1099 = vrot.lane.b32.xlu0 %v2093_v36, %s2447_s28  ;;  %v1235_v36 = vpack.i.b16 %v1234_v22, %v1233_v17  ;;  %v1570_v32 = vshrl.u32 %v3246_v35, 16  ;;  %v898_v17 = vpack.i.b16 %v2966_v41, %v2969_v43  ;;  %v1080_v22 = vpack.i.b16 %v1079_v51, %v1078_v48 }
  0xf6   : > { %946 = vrot.lane.b32.xlu1 %v2088_v25, %s2449_s9  ;;  %v1569_v25 = vpack.i.b16 %v3243_v47, %v3246_v35  ;;  %v2095_v48 = vcombine.low %v1080_v22, %v1080_v22 }
  0xf7   : > { %v1647_v8 = vpop.permute.xlu1 %1646  ;;  %v1645_v2 = vpop.permute.xlu0 %1644 }
  0xf8   : > { %v1694_v56 = vcombine.low %v1639_v57, %v1647_v8  ;;  %v1660_v49 = vcombine.low %v1637_v28, %v1645_v2  ;;  %1432 = vrot.lane.b32.xlu0 %v2111_v26, %s2443_s11  ;;  %v1571_v57 = vshrl.u32 %v3243_v47, 16  ;;  %v1416_v8 = vshrl.u32 %v1404_v59, 16 }
  0xfa   : > { %1252 = vrot.lane.b32.xlu1 %v2098_v11, %s2445_s24  ;;  %v3256_v28 = vrot.slane %v1694_v56, %v2725_v18  ;;  %v3259_v34 = vrot.slane %v1660_v49, %v2725_v18  ;;  %v2100_v49 = vcombine.low %v1235_v36, %v1235_v36  ;;  %v1572_v0 = vpack.i.b16 %v1571_v57, %v1570_v32 }
  0xfb   : > { %v1651_v16 = vpop.permute.xlu1 %1650  ;;  %v1649_v5 = vpop.permute.xlu0 %1648  ;;  %v1550_v32 = vcombine.high %v3209_v38, %v3215_v14  ;;  %v1531_v36 = vcombine.high %v3246_v35, %v2442_v44  ;;  %v1565_v57 = vcombine.high %v3243_v47, %v2442_v44 }
  0xfc   : > { %v1702_v26 = vcombine.low %v1643_v6, %v1651_v16  ;;  %v1668_v20 = vcombine.low %v1641_v39, %v1649_v5  ;;  %1103 = vrot.lane.b32.xlu0 %v2094_v27, %s2448_s8  ;;  %v1183_v6 = vcombine.high %v1181_v52, %v2442_v44  ;;  %v1217_v39 = vcombine.high %v1215_v33, %v2442_v44 }
  0xfd   : > { %v301_v52 = vpack.i.b16 %v2985_v21, %v2979_v10  ;;  %v1516_v27 = vcombine.high %v3212_v62, %v3218_v45  ;;  %v2118_v16 = vcombine.low %v1572_v0, %v1572_v0  ;;  %v1564_v45 = vrot.slane %v1550_v32, %v2889_v42 }
  0xfe   : > { %1256 = vrot.lane.b32.xlu1 %v2099_v40, %s2446_s27  ;;  %v3264_v2 = vrot.slane %v1702_v26, %v2725_v18  ;;  %v3267_v61 = vrot.slane %v1668_v20, %v2725_v18  ;;  %v1417_v18 = vpack.i.b16 %v1416_v8, %v1415_v13  ;;  %v1238_v5 = vpack.i.b16 %v1217_v39, %v1183_v6 }
  0xff   : > { %v923_v11 = vpop.permute.xlu1 %922  ;;  %v326_v56 = vpop.permute.xlu0 %325  ;;  %v1530_v26 = vrot.slane %v1516_v27, %v2889_v42  ;;  %v1239_v20 = vshrl.u32 %v1183_v6, 16  ;;  %v1575_v22 = vpack.i.b16 %v1565_v57, %v1531_v36  ;;  %v1583_v0 = vshrl.u32 %v1564_v45, 16 }
 0x100   : > { %v1710_v53 = vcombine.low %v3256_v28, %v3264_v2  ;;  %v1676_v59 = vcombine.low %v3259_v34, %v3267_v61  ;;  %1436 = vrot.lane.b32.xlu0 %v2112_v15, %s2444_s23  ;;  %v950_v33 = vsel %vm351_vm6, %v898_v17, %v923_v11  ;;  %v2113_v10 = vcombine.low %v1417_v18, %v1417_v18 }
 0x101   : > { %v354_v14 = vsel %vm351_vm6, %v301_v52, %v326_v56  ;;  %v1240_v15 = vshrl.u32 %v1217_v39, 16  ;;  %v2101_v17 = vcombine.low %v1238_v5, %v1238_v5  ;;  %v1576_v18 = vshrl.u32 %v1531_v36, 16 }
 0x102   : > { %v3279_v41 = vrot.slane %v1710_v53, %v2889_v42  ;;  %v3282_v43 = vrot.slane %v1676_v59, %v2889_v42  ;;  %1260 = vrot.lane.b32.xlu1 %v2100_v49, %s2447_s28  ;;  %v2114_v53 = vcombine.low %v3019_v55, %v3019_v55  ;;  %v1582_v49 = vshrl.u32 %v1530_v26, 16 }
 0x103   : > { %v927_v51 = vpop.permute.xlu1 %926  ;;  %v330_v40 = vpop.permute.xlu0 %329  ;;  %v1241_v39 = vpack.i.b16 %v1240_v15, %v1239_v20  ;;  %v2119_v32 = vcombine.low %v1575_v22, %v1575_v22  ;;  %v1577_v27 = vshrl.u32 %v1565_v57, 16  ;;  %v1532_v20 = vcombine.high %v1530_v26, %v2442_v44 }
 0x104   : > { %1107 = vrot.lane.b32.xlu0 %v2095_v48, %s2449_s9  ;;  %v1731_v21 = vshrl.u32 %v3282_v43, 16  ;;  %v1732_v38 = vshrl.u32 %v3279_v41, 16  ;;  %v952_v62 = vsel %vm355_vm7, %v950_v33, %v927_v51  ;;  %v357_v56 = vsel %vm355_vm7, %v354_v14, %v330_v40 }
 0x105   : > { %v1730_v6 = vpack.i.b16 %v3279_v41, %v3282_v43  ;;  %v1726_v40 = vcombine.high %v3279_v41, %v2442_v44  ;;  %v1584_v5 = vpack.i.b16 %v1583_v0, %v1582_v49  ;;  %v1566_v14 = vcombine.high %v1564_v45, %v2442_v44 }
 0x106   : > { %1593 = vrot.lane.b32.xlu1 %v2118_v16, %s2443_s11  ;;  %v1733_v59 = vpack.i.b16 %v1732_v38, %v1731_v21  ;;  %v1692_v16 = vcombine.high %v3282_v43, %v2442_v44  ;;  %v2102_v21 = vcombine.low %v1241_v39, %v1241_v39  ;;  %v1578_v38 = vpack.i.b16 %v1577_v27, %v1576_v18 }
 0x107   : > { %v931_v13 = vpop.permute.xlu1 %930  ;;  %v334_v8 = vpop.permute.xlu0 %333  ;;  %v1711_v15 = vcombine.high %v3256_v28, %v3264_v2  ;;  %v2116_v39 = vcombine.low %v3035_v19, %v3035_v19  ;;  %v1588_v49 = vshrl.u32 %v1532_v20, 16 }
 0x108   : > { %v954_v11 = vsel %vm358_vm8, %v952_v62, %v931_v13  ;;  %1440 = vrot.lane.b32.xlu0 %v2113_v10, %s2445_s24  ;;  %v360_v48 = vsel %vm358_vm8, %v357_v56, %v334_v8  ;;  %v2125_v51 = vcombine.low %v1733_v59, %v1733_v59  ;;  %v1677_v8 = vcombine.high %v3259_v34, %v3267_v61 }
 0x109   : > { %v1737_v22 = vshrl.u32 %v1692_v16, 16  ;;  %v2120_v59 = vcombine.low %v1578_v38, %v1578_v38  ;;  %v1581_v56 = vpack.i.b16 %v1564_v45, %v1530_v26  ;;  %v1725_v2 = vrot.slane %v1711_v15, %v2889_v42 }
 0x10a   : > { %1264 = vrot.lane.b32.xlu1 %v2101_v17, %s2448_s8  ;;  %v2122_v17 = vcombine.low %v1584_v5, %v1584_v5  ;;  %v1589_v34 = vshrl.u32 %v1566_v14, 16  ;;  %v1691_v61 = vrot.slane %v1677_v8, %v2889_v42  ;;  %v2115_v26 = vcombine.low %v3045_v30, %v3045_v30 }
 0x10b   : > { %v935_v33 = vpop.permute.xlu1 %934  ;;  %v338_v52 = vpop.permute.xlu0 %337  ;;  %v1727_v19 = vcombine.high %v1725_v2, %v2442_v44 }
 0x10c   : > { %v956_v55 = vsel %vm361_vm9, %v954_v11, %v935_v33  ;;  %1444 = vrot.lane.b32.xlu0 %v2114_v53, %s2446_s27  ;;  %v363_v36 = vsel %vm361_vm9, %v360_v48, %v338_v52  ;;  %v1738_v11 = vshrl.u32 %v1726_v40, 16  ;;  %v2121_v33 = vcombine.low %v1581_v56, %v1581_v56 }
 0x10d   : > { %v1590_v52 = vpack.i.b16 %v1589_v34, %v1588_v49  ;;  %v1743_v42 = vshrl.u32 %v1691_v61, 16  ;;  %v1744_v48 = vshrl.u32 %v1725_v2, 16  ;;  %v1742_v15 = vpack.i.b16 %v1725_v2, %v1691_v61 }
 0x10e   : > { %1597 = vrot.lane.b32.xlu1 %v2119_v32, %s2444_s23  ;;  %v1739_v0 = vpack.i.b16 %v1738_v11, %v1737_v22  ;;  %v1693_v32 = vcombine.high %v1691_v61, %v2442_v44 }
 0x10f   : > { %v939_v57 = vpop.permute.xlu1 %938  ;;  %v342_v10 = vpop.permute.xlu0 %341  ;;  %v1745_v5 = vpack.i.b16 %v1744_v48, %v1743_v42 }
 0x110   : > { %v3322_v62 = vsel %vm364_vm10, %v956_v55, %v939_v57  ;;  %1754 = vrot.lane.b32.xlu0 %v2125_v51, %s2443_s11  ;;  %v366_v13 = vsel %vm364_vm10, %v363_v36, %v342_v10  ;;  %v2127_v27 = vcombine.low %v1739_v0, %v1739_v0  ;;  %v1736_v55 = vpack.i.b16 %v1726_v40, %v1692_v16  ;;  %s195_s11 = scalar_lea.vmem [#allocation3], %s2056_s19  ;;  %s2290_s19 = sshll.u32 %s2452_s4, 4  ;;  %s2291_s19 = int_to_ptr.vmem [resolvable:$false] %s2290_s19 }
 0x111   : > { %v2124_v51 = vcombine.low %v1590_v52, %v1590_v52  ;;  %v1749_v36 = vshrl.u32 %v1693_v32, 16  ;;  %v1750_v57 = vshrl.u32 %v1727_v19, 16  ;;  %v2129_v30 = vcombine.low %v1745_v5, %v1745_v5  ;;  %s2292_s0 = scalar_lea.vmem %s2291_s19, 256 }
 0x112   : > { %1268 = vrot.lane.b32.xlu1 %v2102_v21, %s2449_s9  ;;  %v2126_v10 = vcombine.low %v1736_v55, %v1736_v55  ;;  %v1587_v21 = vpack.i.b16 %v1566_v14, %v1532_v20  ;;  %v2117_v40 = vcombine.low %v3051_v12, %v3051_v12  ;;  %v2128_v20 = vcombine.low %v1742_v15, %v1742_v15 }
 0x113   : > { %v346_v53 = vpop.permute.xlu0 %345  ;;  %v1751_v44 = vpack.i.b16 %v1750_v57, %v1749_v36 }
 0x114   : > { %1609 = vrot.lane.b32.xlu0 %v2122_v17, %s2447_s28  ;;  %v369_v28 = vsel %vm367_vm11, %v366_v13, %v346_v53  ;;  %v2123_v38 = vcombine.low %v1587_v21, %v1587_v21  ;;  %v1748_v13 = vpack.i.b16 %v1727_v19, %v1693_v32 }
 0x115   : > { %v2131_v16 = vcombine.low %v1751_v44, %v1751_v44 }
 0x116   : > { %1601 = vrot.lane.b32.xlu1 %v2120_v59, %s2445_s24  ;;  %v2130_v17 = vcombine.low %v1748_v13, %v1748_v13 }
 0x117   : > { %v350_v18 = vpop.permute.xlu0 %349 }
 0x118   : > { %v372_v45 = vsel %vm370_vm12, %v369_v28, %v350_v18  ;;  %1452 = vrot.lane.b32.xlu0 %v2116_v39, %s2448_s8 }
 0x119   : > { %374 = vst [vmem:[#allocation2] sm:$0xf] %v372_v45 }
 0x11a   : > { %1605 = vrot.lane.b32.xlu1 %v2121_v33, %s2446_s27 }
 0x11c   : > { %1762 = vrot.lane.b32.xlu0 %v2127_v27, %s2445_s24 }
 0x11e   : > { %1448 = vrot.lane.b32.xlu1 %v2115_v26, %s2447_s28 }
 0x120   : > { %1617 = vrot.lane.b32.xlu0 %v2124_v51, %s2449_s9 }
 0x122   : > { %1758 = vrot.lane.b32.xlu1 %v2126_v10, %s2444_s23  ;;  %s2141_s23 = sshll.u32 %s2598_s7, 7 }
 0x124   : > { %1770 = vrot.lane.b32.xlu0 %v2129_v30, %s2447_s28  ;;  %s3444_s28 = scalar_lea.hbm %s3537_s2, %s2141_s23 }
 0x126   : > { %1613 = vrot.lane.b32.xlu1 %v2123_v38, %s2448_s8 }
 0x128   : > { %1778 = vrot.lane.b32.xlu0 %v2131_v16, %s2449_s9 }
 0x12a   : > { %1456 = vrot.lane.b32.xlu1 %v2117_v40, %s2449_s9  ;;  %v514_v14 = vpop.permute.xlu1 %513  ;;  %s1906_s9 = scalar_lea.sflag [#allocation4], %s193_s18 }
 0x12e   : > { %1766 = vrot.lane.b32.xlu1 %v2128_v20, %s2446_s27  ;;  %v502_v8 = vpop.permute.xlu1 %501 }
 0x12f   : > { %v529_v59 = vsel %vm351_vm6, %v477_v23, %v502_v8 }
 0x132   : > { %1774 = vrot.lane.b32.xlu1 %v2130_v17, %s2448_s8  ;;  %v506_v22 = vpop.permute.xlu1 %505  ;;  %s1926_s8 = sshll.u32 %s195_s11, 4  ;;  %s1927_s8 = int_to_ptr.vmem [resolvable:$true] %s1926_s8 }
 0x133   : > { %v531_v56 = vsel %vm355_vm7, %v529_v59, %v506_v22  ;;  %s2286_s10 = scalar_lea.vmem %s1927_s8, 128  ;;  %p2293_p9 = scmp.lt.s32.totalorder %s1927_s8, %s2291_s19 }
 0x134   : > { %p2287_p2 = scmp.ne.s32.totalorder %s1927_s8, %s2286_s10  ;;  %p2294_p10 = scmp.lt.s32.totalorder %s2292_s0, %s2286_s10 }
 0x136   : > { %v518_v12 = vpop.permute.xlu1 %517  ;;  %p2288_p6 = pnand %p2287_p2, %p2547_p3  ;;  %p2295_p11 = por %p2294_p10, %p2293_p9 }
 0x138   : > { %p2289_p8 = pneg %p2288_p6 }
 0x13a   : > { %v522_v11 = vpop.permute.xlu1 %521  ;;  %v675_v53 = vpop.permute.xlu0 %674  ;;  %p2296_p12 = pnand %p2295_p11, %p2289_p8 }
 0x13e   : > { %v510_v39 = vpop.permute.xlu1 %509  ;;  %v663_v28 = vpop.permute.xlu0 %662 }
 0x13f   : > { %v533_v2 = vsel %vm358_vm8, %v531_v56, %v510_v39  ;;  %v690_v19 = vsel %vm351_vm6, %v638_v31, %v663_v28 }
 0x140   : > { %v535_v49 = vsel %vm361_vm9, %v533_v2, %v514_v14 }
 0x141   : > { %v537_v34 = vsel %vm364_vm10, %v535_v49, %v518_v12 }
 0x142   : > { %v539_v61 = vsel %vm367_vm11, %v537_v34, %v522_v11  ;;  %v526_v0 = vpop.permute.xlu1 %525  ;;  %v667_v33 = vpop.permute.xlu0 %666 }
 0x143   : > { %v541_v18 = vsel %vm370_vm12, %v539_v61, %v526_v0  ;;  %v692_v26 = vsel %vm355_vm7, %v690_v19, %v667_v33 }
 0x144   : > { %543 = vst [vmem:[#allocation2 + $0x4] sm:$0xf] %v541_v18 }
 0x146   : > { %v679_v63 = vpop.permute.xlu0 %678 }
 0x14a   : > { %v671_v60 = vpop.permute.xlu0 %670 }
 0x14b   : > { %v2281_v23 = vld [vmem:[#allocation2] sm:$0xff]   ;;  %v694_v32 = vsel %vm358_vm8, %v692_v26, %v671_v60 }
 0x14c   : > { %2154 = vmatpush3.bf16.msra.mxu0 %v2281_v23  ;;  %v696_v27 = vsel %vm361_vm9, %v694_v32, %v675_v53 }
 0x14d   : > { %2155 = vmatprep.subr.bf16.mxu0 %v2450_v54  ;;  %v698_v48 = vsel %vm364_vm10, %v696_v27, %v679_v63 }
 0x14e   : > { %v1084_v45 = vpop.permute.xlu0 %1083 }
 0x14f   : > { %v1111_v20 = vsel %vm351_vm6, %v1059_v37, %v1084_v45  ;;  %v1408_v45 = vpack.i.b16 %v3191_v58, %v3197_v4 }
 0x152   : > { %v683_v52 = vpop.permute.xlu0 %682 }
 0x153   : > { %v700_v55 = vsel %vm367_vm11, %v698_v48, %v683_v52 }
 0x156   : > { %v1088_v42 = vpop.permute.xlu0 %1087 }
 0x157   : > { %v1113_v13 = vsel %vm355_vm7, %v1111_v20, %v1088_v42 }
 0x15a   : > { %v687_v51 = vpop.permute.xlu0 %686 }
 0x15b   : > { %v702_v5 = vsel %vm370_vm12, %v700_v55, %v687_v51 }
 0x15c   : > { %v1245_v36 = vpop.permute.xlu1 %1244  ;;  %704 = vst [vmem:[#allocation2 + $0x8] sm:$0xf] %v702_v5 }
 0x15d   : > { %v1272_v56 = vsel %vm351_vm6, %v1220_v7, %v1245_v36 }
 0x15e   : > { %v1092_v1 = vpop.permute.xlu0 %1091 }
 0x160   : > { %v943_v9 = vpop.permute.xlu1 %942 }
 0x161   : > { %v960_v21 = vsel %vm367_vm11, %v3322_v62, %v943_v9  ;;  %v1115_v62 = vsel %vm358_vm8, %v1113_v13, %v1092_v1 }
 0x162   : > { %v1096_v31 = vpop.permute.xlu0 %1095 }
 0x163   : > { %v1117_v22 = vsel %vm361_vm9, %v1115_v62, %v1096_v31 }
 0x164   : > { %v1249_v57 = vpop.permute.xlu1 %1248 }
 0x165   : > { %v1274_v28 = vsel %vm355_vm7, %v1272_v56, %v1249_v57 }
 0x166   : > { %v1100_v10 = vpop.permute.xlu0 %1099 }
 0x167   : > { %v1119_v12 = vsel %vm364_vm10, %v1117_v22, %v1100_v10 }
 0x168   : > { %v947_v30 = vpop.permute.xlu1 %946 }
 0x169   : > { %v962_v44 = vsel %vm370_vm12, %v960_v21, %v947_v30 }
 0x16a   : > { %964 = vst [vmem:[#allocation2 + $0xc] sm:$0xf] %v962_v44  ;;  %v1433_v38 = vpop.permute.xlu0 %1432 }
 0x16b   : > { %v1460_v52 = vsel %vm351_vm6, %v1408_v45, %v1433_v38 }
 0x16c   : > { %v1253_v40 = vpop.permute.xlu1 %1252 }
 0x16d   : > { %v1276_v49 = vsel %vm358_vm8, %v1274_v28, %v1253_v40 }
 0x16e   : > { %v1104_v16 = vpop.permute.xlu0 %1103 }
 0x16f   : > { %v1121_v11 = vsel %vm367_vm11, %v1119_v12, %v1104_v16 }
 0x170   : > { %v1257_v15 = vpop.permute.xlu1 %1256 }
 0x171   : > { %v2282_v14 = vld [vmem:[#allocation2 + $0x8] sm:$0xff]   ;;  %v1278_v34 = vsel %vm361_vm9, %v1276_v49, %v1257_v15 }
 0x172   : > { %v1437_v8 = vpop.permute.xlu0 %1436  ;;  %2156 = vmatpush3.bf16.msra.mxu0 %v2282_v14 }
 0x173   : > { %2157 = vmatprep.subr.bf16.mxu0 %v2450_v54  ;;  %v1462_v58 = vsel %vm355_vm7, %v1460_v52, %v1437_v8  ;;  %v1797_v8 = vld [vmem:[%s3536_s1] sm:$0xf] }
 0x174   : > { %v1261_v17 = vpop.permute.xlu1 %1260 }
 0x175   : > { %v1280_v61 = vsel %vm364_vm10, %v1278_v34, %v1261_v17 }
 0x176   : > { %v1108_v53 = vpop.permute.xlu0 %1107 }
 0x177   : > { %v1123_v24 = vsel %vm370_vm12, %v1121_v11, %v1108_v53 }
 0x178   : > { %v1594_v3 = vpop.permute.xlu1 %1593  ;;  %1125 = vst [vmem:[#allocation2 + $0x10] sm:$0xf] %v1123_v24 }
 0x179   : > { %v1621_v26 = vsel %vm351_vm6, %v1569_v25, %v1594_v3 }
 0x17a   : > { %v1441_v37 = vpop.permute.xlu0 %1440 }
 0x17b   : > { %v1464_v4 = vsel %vm358_vm8, %v1462_v58, %v1441_v37 }
 0x17c   : > { %v1265_v59 = vpop.permute.xlu1 %1264 }
 0x17d   : > { %v1282_v18 = vsel %vm367_vm11, %v1280_v61, %v1265_v59 }
 0x17e   : > { %v1445_v39 = vpop.permute.xlu0 %1444 }
 0x17f   : > { %v1466_v51 = vsel %vm361_vm9, %v1464_v4, %v1445_v39 }
 0x180   : > { %v1598_v2 = vpop.permute.xlu1 %1597 }
 0x181   : > { %v1623_v32 = vsel %vm355_vm7, %v1621_v26, %v1598_v2 }
 0x182   : > { %v1755_v0 = vpop.permute.xlu0 %1754 }
 0x183   : > { %v1782_v9 = vsel %vm351_vm6, %v1730_v6, %v1755_v0 }
 0x184   : > { %v1269_v33 = vpop.permute.xlu1 %1268 }
 0x185   : > { %v1284_v63 = vsel %vm370_vm12, %v1282_v18, %v1269_v33 }
 0x186   : > { %1286 = vst [vmem:[#allocation2 + $0x14] sm:$0xf] %v1284_v63  ;;  %v1610_v29 = vpop.permute.xlu0 %1609 }
 0x188   : > { %v1602_v50 = vpop.permute.xlu1 %1601 }
 0x189   : > { %v1625_v42 = vsel %vm358_vm8, %v1623_v32, %v1602_v50 }
 0x18a   : > { %v1453_v60 = vpop.permute.xlu0 %1452 }
 0x18c   : > { %v1606_v7 = vpop.permute.xlu1 %1605 }
 0x18d   : > { %v2283_v23 = vld [vmem:[#allocation2 + $0x10] sm:$0xff]   ;;  %v1627_v55 = vsel %vm361_vm9, %v1625_v42, %v1606_v7 }
 0x18e   : > { %2158 = vmatpush3.bf16.msra.mxu0 %v2283_v23  ;;  %v1763_v27 = vpop.permute.xlu0 %1762  ;;  %v1629_v47 = vsel %vm364_vm10, %v1627_v55, %v1610_v29 }
 0x18f   : > { %2159 = vmatprep.subr.bf16.mxu0 %v2450_v54 }
 0x190   : > { %v1449_v19 = vpop.permute.xlu1 %1448 }
 0x191   : > { %v1468_v35 = vsel %vm364_vm10, %v1466_v51, %v1449_v19 }
 0x192   : > { %v1618_v25 = vpop.permute.xlu0 %1617  ;;  %v1470_v57 = vsel %vm367_vm11, %v1468_v35, %v1453_v60 }
 0x194   : > { %v1759_v48 = vpop.permute.xlu1 %1758 }
 0x195   : > { %v1784_v10 = vsel %vm355_vm7, %v1782_v9, %v1759_v48 }
 0x196   : > { %v1771_v30 = vpop.permute.xlu0 %1770  ;;  %v1786_v38 = vsel %vm358_vm8, %v1784_v10, %v1763_v27 }
 0x198   : > { %v1614_v5 = vpop.permute.xlu1 %1613 }
 0x199   : > { %v1631_v36 = vsel %vm367_vm11, %v1629_v47, %v1614_v5 }
 0x19a   : > { %v1633_v1 = vsel %vm370_vm12, %v1631_v36, %v1618_v25  ;;  %v1779_v43 = vpop.permute.xlu0 %1778 }
 0x19b   : > { %1635 = vst [vmem:[#allocation2 + $0x1c] sm:$0xf] %v1633_v1 }
 0x19c   : > { %v1457_v31 = vpop.permute.xlu1 %1456 }
 0x19d   : > { %v1472_v21 = vsel %vm370_vm12, %v1470_v57, %v1457_v31 }
 0x19e   : > { %1474 = vst [vmem:[#allocation2 + $0x18] sm:$0xf] %v1472_v21 }
 0x1a0   : > { %v1767_v44 = vpop.permute.xlu1 %1766 }
 0x1a1   : > { %v1788_v40 = vsel %vm361_vm9, %v1786_v38, %v1767_v44 }
 0x1a2   : > { %v1790_v41 = vsel %vm364_vm10, %v1788_v40, %v1771_v30 }
 0x1a4   : > { %v1775_v16 = vpop.permute.xlu1 %1774 }
 0x1a5   : > { %v1792_v6 = vsel %vm367_vm11, %v1790_v41, %v1775_v16  ;;  %v2284_v15 = vld [vmem:[#allocation2 + $0x18] sm:$0xff]  }
 0x1a6   : > { %v1794_v14 = vsel %vm370_vm12, %v1792_v6, %v1779_v43  ;;  %2160 = vmatpush3.bf16.msra.mxu0 %v2284_v15 }
 0x1a7   : > { %1796 = vst [vmem:[#allocation2 + $0x20] sm:$0xf] %v1794_v14  ;;  %2161 = vmatprep.subr.bf16.mxu0 %v2450_v54 }
 0x1ae   : > { %v2285_v20 = vld [vmem:[#allocation2 + $0x20] ss:$0 sps:$4 sm:$0xff]  }
 0x1af   : > { %v1840_v13 = vsel %vm1838_vm14, %v2285_v20, 0 }
 0x1b0   : > { %2162 = vmatpush3.bf16.msra.mxu0 %v1840_v13 }
 0x1b3   : > { %2164 = vmatmul.mubr.msk.bf16.vlgmr.msra.gmra.mrb[0].mxu0 %vm1834_vm15, %v1797_v8 }
 0x286   : > { %v1876_v62 = vpop.f32.mrb[0].mxu0 }
 0x287   : > { %v1895_v17 = vmul.f32 %v1876_v62, %v1876_v62  ;;  %1883 = vadd.xlane.f32.xlu1 %v1876_v62  ;;  %v2165_v22 = vpop.f32.mrb[1].mxu0  ;;  %1882 = vst [vmem:[%s195_s11] sm:$0xff] %v1876_v62 }
 0x288   : > { %v1879_v54 = vpop.f32.mrb[2].mxu0 }
 0x289   : > { %1896 = vadd.xlane.f32.xlu0 %v1895_v17  ;;  %v2166_v12 = vpop.f32.mrb[3].mxu0 }
 0x28a   : > { %2299 = shalt.err (!%p2296_p12)
}
 0x28b   : > { %s2300_s18 = scalar_lea.hbm %s3444_s28, 128  ;;  %s2304_s24 = scalar_lea.hbm %s3537_s2, 512 }
 0x28c   : > { %p2301_p13 = scmp.ne.s32.totalorder %s3444_s28, %s2300_s18  ;;  %p2305_p2 = scmp.lt.u32.totalorder %s3444_s28, %s3537_s2 }
 0x28d   : > { %p2306_p6 = scmp.lt.u32.totalorder %s2304_s24, %s2300_s18  ;;  %p2308_p9 = scmp.lt.u32.totalorder %s2300_s18, %s3444_s28 }
 0x28e   : > { %p2302_p4 = pnand %p2301_p13, %p2547_p3 }
 0x28f   : > { %p2307_p8 = por %p2306_p6, %p2305_p2 }
 0x290   : > { %p2303_p5 = pneg %p2302_p4 }
 0x291   : > { %p2309_p10 = por %p2308_p9, %p2307_p8 }
 0x293   : > { %p2310_p11 = pnand %p2309_p10, %p2303_p5 }
 0x295   : > { %2313 = shalt.err (!%p2310_p11)
}
 0x296   : > { %2167 = dma.vmem_to_hbm [thread:$0]  (%p2547_p3), %s1927_s8, 128, %s3444_s28, %s1906_s9   ;;  %v3556_v11 = vlaneseq  ;;  %vm1893_vm0 = vcmask 57344  }
 0x297   : > { %s200_s0 = sand.u32 1, %s2400_s13   ;;  %s2143_s19 = sshll.u32 %s2598_s7, 5 }
 0x298   : > { %v1887_v53 = vand.u32 127, %v3556_v11  ;;  %s2057_s10 = sshll.u32 %s200_s0, 1  ;;  %s3557_s24 = sld [smem:[#allocation11_spill]] }
 0x299   : > { %s202_s18 = scalar_lea.vmem [#allocation5], %s2057_s10  ;;  %s1911_s8 = scalar_lea.sflag [#allocation6], %s200_s0 }
 0x29a   : > { %v1890_v24 = vsub.s32 %v1887_v53, %v2683_v46  ;;  %s1941_s11 = sshll.u32 %s202_s18, 4  ;;  %s2453_s7 = smov [#allocation5]   ;;  %s3472_s11 = int_to_ptr.vmem [resolvable:$true] %s1941_s11 }
 0x29b   : > { %s2314_s9 = scalar_lea.vmem %s3472_s11, 32  ;;  %s2318_s27 = sshll.u32 %s2453_s7, 4  ;;  %s2319_s27 = int_to_ptr.vmem [resolvable:$false] %s2318_s27 }
 0x29c   : > { %p2315_p3 = scmp.ne.s32.totalorder %s3472_s11, %s2314_s9  ;;  %s2320_s4 = scalar_lea.vmem %s2319_s27, 64 }
 0x29d   : > { %p2321_p4 = scmp.lt.s32.totalorder %s3472_s11, %s2319_s27  ;;  %p2322_p5 = scmp.lt.s32.totalorder %s2320_s4, %s2314_s9 }
 0x29e   : > { %s3470_s28 = scalar_lea.hbm %s3557_s24, %s2143_s19  ;;  %p2316_p12 = pnand %p2315_p3, %p2586_p0 }
 0x29f   : > { %p2323_p2 = por %p2322_p5, %p2321_p4 }
 0x2a0   : > { %p2317_p13 = pneg %p2316_p12 }
 0x2a2   : > { %p2324_p6 = pnand %p2323_p2, %p2317_p13 }
 0x314   : > { %v1884_v3 = vpop.xlane.xlu1 %1883 }
 0x315   : > { %v1891_v37 = vrot.slane %v1884_v3, %v1890_v24 }
 0x316   : > { %v1897_v59 = vpop.xlane.xlu0 %1896 }
 0x317   : > { %1894 = vst.msk [vmem:[%s202_s18] sm:$0x1] %vm1893_vm0, %v1891_v37  ;;  %v1902_v56 = vrot.slane %v1897_v59, %v1890_v24 }
 0x319   : > { %1904 = vst.msk [vmem:[%s202_s18 + $0x1] sm:$0x1] %vm1893_vm0, %v1902_v56 }
 0x31a   : > { %2327 = shalt.err (!%p2324_p6)
}
 0x31b   : > { %s2328_s0 = scalar_lea.hbm %s3470_s28, 32  ;;  %s2332_s18 = scalar_lea.hbm %s3557_s24, 128 }
 0x31c   : > { %p2329_p8 = scmp.ne.s32.totalorder %s3470_s28, %s2328_s0  ;;  %p2333_p11 = scmp.lt.u32.totalorder %s3470_s28, %s3557_s24 }
 0x31d   : > { %p2334_p3 = scmp.lt.u32.totalorder %s2332_s18, %s2328_s0  ;;  %p2336_p13 = scmp.lt.u32.totalorder %s2328_s0, %s3470_s28 }
 0x31e   : > { %p2330_p9 = pnand %p2329_p8, %p2586_p0 }
 0x31f   : > { %p2335_p12 = por %p2334_p3, %p2333_p11 }
 0x320   : > { %p2331_p10 = pneg %p2330_p9 }
 0x321   : > { %p2337_p4 = por %p2336_p13, %p2335_p12 }
 0x323   : > { %p2338_p5 = pnand %p2337_p4, %p2331_p10 }
 0x325   : > { %2341 = shalt.err (!%p2338_p5)
}
 0x326   : > { %2168 = dma.vmem_to_hbm [thread:$0]  (%p2586_p0), %s3472_s11, 32, %s3470_s28, %s1911_s8  }
 0x327 PF: > { %s3558_s9 = sld [smem:[#allocation9_spill]]  ;;  %p2178_p2 = scmp.ge.s32.totalorder %s2436_s22, 2 }
 0x329   : > { %p2172_p6 = pnand %p2178_p2, %p2562_p7 }
 0x32d   : > { %s1953_s7 = sand.u32 1, %s3558_s9  }
 0x32e   : > { %s1954_s27 = scalar_lea.sflag [#allocation4], %s1953_s7 }
 0x32f   : > { %2387 = dma.done.wait (!%p2172_p6), %s1954_s27, 128  }
 0x330   : > { %2389 = vsyncadd (!%p2172_p6), %s1954_s27, 4294967168  ;;  %s1962_s4 = sand.u32 1, %s2396_s12   ;;  %p2175_p8 = pnand %p2178_p2, %p2592_p1 }
 0x331   : > { %s1963_s5 = scalar_lea.sflag [#allocation6], %s1962_s4 }
 0x332   : > { %2391 = dma.done.wait (!%p2175_p8), %s1963_s5, 32  }
 0x333   : > { %2393 = vsyncadd (!%p2175_p8), %s1963_s5, 4294967264  ;;  %s20_s22 = sadd.s32 1, %s2436_s22   ;;  %s3559_s6 = smov %s2573_s15 }
 0x334   : > { %p17_p0 = scmp.ge.s32.totalorder %s20_s22, 6   ;;  %s3560_s12 = smov %s2400_s13 }
 0x335   : > { %s3561_s13 = smov %s2404_s14  ;;  %s3562_s14 = smov %s2576_s3 }
 0x336   : > { %s3563_s15 = smov %s2412_s16  ;;  %s3564_s16 = smov %s2416_s17 }
 0x337   : > { %s3565_s17 = smov %s3559_s6  ;;  %s3566_s18 = smov %s2428_s20 }
 0x338   : > { %s3567_s19 = smov %s2432_s21  ;;  %s3568_s20 = smov %s3571_s25 }
 0x339   : > { %s3569_s21 = smov %s3575_s26  ;;  %19 = sbr.rel (!%p17_p0) target bundleno = 12 (0xc), region = 80 }
 0x340   :  { %1968 = vsyncpa [#allocation4], 1 }
 0x341   :  { %1970 = vsyncpa [#allocation4 + $0x1], 1 }
 0x342   :  { %1971 = vsyncpa [#allocation6], 1 }
 0x343   :  { %1973 = vsyncpa [#allocation6 + $0x1], 1 }

</bundles_post_ra>
